<compile_context>
chip_gen: v7x
topology: tpu7x:2x2x1
jax: 0.10.0
libtpu: 0.0.40
codegen_flags: <defaults>
</compile_context>

<pallas_src>
import functools

import jax
import jax.numpy as jnp
from jax import lax
from jax.experimental import pallas as pl
from jax.experimental.pallas import tpu as pltpu

# small, TPU-friendly toy shapes (real model: H=768, R=len(deprel_i2l))
H = 128      # hidden size
R = 8        # number of dependency-relation labels
MSEQ = 8     # max sequence length
BS = 2       # batch size


def dp_kernel(x_ref, w_all_ref, b_all_ref, w_arc_ref, u_rel_ref,
              w_aff_ref, bias_aff_ref, heads_ref, rel_ref, gath_ref, *, alpha):
    """One grid step == one batch item (grid axis is 'parallel' for v7x)."""
    f32 = jnp.float32
    cdt = w_all_ref.dtype                       # compute dtype (bf16)
    mseq, h = x_ref.shape
    r_num = gath_ref.shape[-1]

    # ---- fused projections (arc_head|arc_dep|rel_head|rel_dep): one MXU pass.
    hid = jnp.dot(x_ref[...].astype(cdt), w_all_ref[...],
                  preferred_element_type=f32) + b_all_ref[...]
    if alpha != 1.0:                            # LeakyReLU(1) == identity (trace-time gate)
        hid = jnp.where(hid >= 0, hid, alpha * hid)
    hid_c = hid.astype(cdt)                     # (mseq, 4H); f32 copy dead after this

    arc_head_c = hid_c[:, 0 * h:1 * h]          # lane-aligned 128-wide column slices
    arc_dep_c = hid_c[:, 1 * h:2 * h]
    rel_head_c = hid_c[:, 2 * h:3 * h]
    rel_dep_c = hid_c[:, 3 * h:4 * h]

    # ---- all affine terms in ONE matmul (arc-bias dot folded in as column R):
    #      cols 0..R-1 = rel_head@w_rel_head + rel_dep@w_rel_dep + rel_bias
    #      col  R      = <arc_head, arc_bias>
    aff = jnp.dot(hid_c, w_aff_ref[...], preferred_element_type=f32) + bias_aff_ref[...]
    per_i = aff[:, :r_num]                      # (mseq, R)
    head_bias = aff[:, r_num:r_num + 1]         # (mseq, 1)

    # ---- arc scores: heads[i, j] = <arc_head_i, arc_dep_j @ w_arc> + head_bias[i]
    # TODO(synk): ad_w is rounded to bf16 before the second matmul; near-tie argmax
    # heads can differ from a pure-f32 path (acceptable at the stated tolerance).
    ad_w = jnp.dot(arc_dep_c, w_arc_ref[...], preferred_element_type=f32)     # (mseq, H)
    heads = lax.dot_general(arc_head_c, ad_w.astype(cdt),
                            (((1,), (1,)), ((), ())),
                            preferred_element_type=f32) + head_bias           # (mseq, mseq)
    heads_ref[...] = heads

    # ---- relation biaffine as ONE fat matmul with M = mseq*R (stationary rel_head RHS)
    lb = jnp.dot(rel_dep_c, u_rel_ref[...], preferred_element_type=f32)       # (mseq, R*H)
    lb_flat = lb.reshape(mseq * r_num, h).astype(cdt)   # the single lane->sublane relayout
    biaff = lax.dot_general(lb_flat, rel_head_c,
                            (((1,), (1,)), ((), ())),
                            preferred_element_type=f32)                       # (mseq*R, mseq)
    rel3 = biaff.reshape(mseq, r_num, mseq) + per_i[:, :, None]               # (i, r, j)
    rel_ref[...] = rel3.reshape(mseq * r_num, mseq)     # direct store, no concat chain

    # ---- gathered_deprels[i, r] = rel[i, r, argmax_j heads[i, j]]
    col = lax.broadcasted_iota(jnp.int32, (mseq, mseq), 1)
    mx = jnp.max(heads, axis=-1, keepdims=True)
    first_max = jnp.min(jnp.where(heads == mx, col, mseq), axis=-1, keepdims=True)
    onehot = (col == first_max).astype(f32)                                   # (mseq, mseq)
    gath_ref[...] = jnp.sum(rel3 * onehot[:, None, :], axis=-1)               # (mseq, R)


def dp_forward(bert_output, params, *, alpha=1.0, compute_dtype=jnp.bfloat16):
    """Pallas implementation of DPModel's parsing head (post-BERT, eval dropout).

    Returns {'heads': (bs, mseq, mseq), 'deprels': (bs, mseq, mseq, R),
             'gathered_deprels': (bs, mseq, R)} matching the PyTorch forward().
    """
    w_all, b_all, w_arc, arc_bias, u_rel, w_rel_head, w_rel_dep, rel_bias = params
    bs, mseq, h = bert_output.shape
    r_num = rel_bias.shape[-1]

    # x stays f32 at the pallas boundary (sublane-aligned (mseq, H) blocks even when
    # mseq % 16 != 0); weights in bf16 (f32 MXU accumulation in-kernel); biases f32.
    x_flat = bert_output.reshape(bs * mseq, h).astype(jnp.float32)
    w_all_c = w_all.astype(compute_dtype)
    w_arc_c = w_arc.astype(compute_dtype)
    u_rel_c = u_rel.astype(compute_dtype)
    b_all_f = b_all.reshape(1, 4 * h).astype(jnp.float32)

    # fold rel_head/rel_dep affine weights AND the arc-bias dot into one (4H, R+1) weight
    zeros_hr = jnp.zeros((h, r_num), jnp.float32)
    w_aff = jnp.concatenate([
        jnp.concatenate([zeros_hr, zeros_hr,
                         w_rel_head.astype(jnp.float32),
                         w_rel_dep.astype(jnp.float32)], axis=0),                # (4H, R)
        jnp.concatenate([arc_bias.reshape(h, 1).astype(jnp.float32),
                         jnp.zeros((3 * h, 1), jnp.float32)], axis=0),           # (4H, 1)
    ], axis=1).astype(compute_dtype)                                             # (4H, R+1)
    bias_aff = jnp.concatenate([rel_bias.reshape(1, r_num).astype(jnp.float32),
                                jnp.zeros((1, 1), jnp.float32)], axis=1)

    inputs = (x_flat, w_all_c, b_all_f, w_arc_c, u_rel_c, w_aff, bias_aff)

    def resident(a):   # whole-array block, constant index -> DMA'd once, stays resident
        return pl.BlockSpec(a.shape, lambda b, _nd=a.ndim: (0,) * _nd)

    in_specs = [
        pl.BlockSpec((mseq, h), lambda b: (b, 0)),       # per-batch token block
        resident(w_all_c), resident(b_all_f), resident(w_arc_c),
        resident(u_rel_c), resident(w_aff), resident(bias_aff),
    ]
    out_shape = (
        jax.ShapeDtypeStruct((bs * mseq, mseq), jnp.float32),           # heads
        jax.ShapeDtypeStruct((bs * mseq * r_num, mseq), jnp.float32),   # deprels (b,i,r | j)
        jax.ShapeDtypeStruct((bs * mseq, r_num), jnp.float32),          # gathered_deprels
    )
    out_specs = (
        pl.BlockSpec((mseq, mseq), lambda b: (b, 0)),
        pl.BlockSpec((mseq * r_num, mseq), lambda b: (b, 0)),
        pl.BlockSpec((mseq, r_num), lambda b: (b, 0)),
    )

    flops = 2 * bs * mseq * h * (4 * h                  # fused projection
                                 + 4 * (r_num + 1)      # affine + arc-bias matmul
                                 + h                    # arc_dep @ w_arc
                                 + mseq                 # arc scores
                                 + r_num * h            # rel_dep @ u_rel
                                 + r_num * mseq)        # fat biaffine
    bytes_accessed = (
        sum(int(a.size) * a.dtype.itemsize for a in inputs)
        + 4 * (bs * mseq * mseq + bs * mseq * r_num * mseq + bs * mseq * r_num))
    cost = pl.CostEstimate(flops=flops, transcendentals=0,
                           bytes_accessed=bytes_accessed)

    heads_f, rel_f, gath_f = pl.pallas_call(
        functools.partial(dp_kernel, alpha=alpha),
        out_shape=out_shape,
        grid=(bs,),
        in_specs=in_specs,
        out_specs=out_specs,
        compiler_params=pltpu.CompilerParams(
            dimension_semantics=("parallel",),          # v7x: 2 TCs; harmless on v5e/v6e
            vmem_limit_bytes=64 * 1024 * 1024),
        cost_estimate=cost,
    )(*inputs)

    heads = heads_f.reshape(bs, mseq, mseq)
    deprels = rel_f.reshape(bs, mseq, r_num, mseq).transpose(0, 1, 3, 2)   # -> (b, i, j, r)
    gathered = gath_f.reshape(bs, mseq, r_num)
    return {"heads": heads, "deprels": deprels, "gathered_deprels": gathered}


def dp_reference(x, params, alpha=1.0):
    """Pure-JAX f32 reference mirroring the PyTorch forward (for verification)."""
    w_all, b_all, w_arc, arc_bias, u_rel, w_rel_head, w_rel_dep, rel_bias = params
    bs, mseq, h = x.shape
    r_num = rel_bias.shape[-1]
    hid = x @ w_all + b_all
    if alpha != 1.0:
        hid = jnp.where(hid >= 0, hid, alpha * hid)
    arc_head, arc_dep, rel_head, rel_dep = (hid[..., i * h:(i + 1) * h] for i in range(4))
    heads = (jnp.einsum('bih,bjh->bij', arc_head, arc_dep @ w_arc)
             + jnp.sum(arc_head * arc_bias.reshape(1, 1, h), axis=-1, keepdims=True))
    lb = (rel_dep @ u_rel).reshape(bs, mseq, r_num, h)
    lb = jnp.einsum('birh,bjh->bijr', lb, rel_head)
    rel = lb + (rel_head @ w_rel_head + rel_dep @ w_rel_dep
                + rel_bias.reshape(1, 1, r_num))[:, :, None, :]
    a = jnp.argmax(heads, axis=-1)
    idx = jnp.broadcast_to(a[:, :, None, None], (bs, mseq, 1, r_num))
    gathered = jnp.take_along_axis(rel, idx, axis=2)[:, :, 0, :]
    return heads, rel, gathered


if __name__ == "__main__":
    key = jax.random.PRNGKey(0)
    ks = jax.random.split(key, 10)
    scale = 0.05
    # "bert_output" stands in for self._bert_model(text, attention_mask)[0]
    bert_output = jax.random.normal(ks[0], (BS, MSEQ, H), jnp.float32)
    w_all      = scale * jax.random.normal(ks[1], (H, 4 * H), jnp.float32)  # arc_head|arc_dep|rel_head|rel_dep weights
    b_all      = scale * jax.random.normal(ks[2], (1, 4 * H), jnp.float32)  # their biases
    w_arc      = scale * jax.random.normal(ks[3], (H, H), jnp.float32)
    arc_bias   = scale * jax.random.normal(ks[4], (1, H), jnp.float32)
    u_rel      = scale * jax.random.normal(ks[5], (H, R * H), jnp.float32)
    w_rel_head = scale * jax.random.normal(ks[6], (H, R), jnp.float32)
    w_rel_dep  = scale * jax.random.normal(ks[7], (H, R), jnp.float32)
    rel_bias   = scale * jax.random.normal(ks[8], (1, R), jnp.float32)
    params = (w_all, b_all, w_arc, arc_bias, u_rel,
              w_rel_head, w_rel_dep, rel_bias)

    out = jax.block_until_ready(jax.jit(dp_forward)(bert_output, params))

    with jax.default_matmul_precision("float32"):
        ref_heads, ref_rel, _ = dp_reference(bert_output, params)
    # tolerance sized for bf16 compute with f32 accumulation
    assert jnp.allclose(out["heads"], ref_heads, atol=7e-2, rtol=5e-2)
    assert jnp.allclose(out["deprels"], ref_rel, atol=7e-2, rtol=5e-2)
    # tie-safe gather check against the kernel's own heads / deprels outputs
    a = jnp.argmax(out["heads"], axis=-1)
    idx = jnp.broadcast_to(a[:, :, None, None], (BS, MSEQ, 1, R))
    g = jnp.take_along_axis(out["deprels"], idx, axis=2)[:, :, 0, :]
    assert jnp.allclose(out["gathered_deprels"], g, atol=1e-5, rtol=1e-5)

    print("KERNEL_OK")
</pallas_src>

<mosaic_0001>
module attributes {stable_mosaic.version = 11 : i64} {
  func.func @dp_kernel(%arg0: i32, %arg1: memref<8x128xf32, #tpu.memory_space<vmem>>, %arg2: memref<128x512xbf16, #tpu.memory_space<vmem>>, %arg3: memref<1x512xf32, #tpu.memory_space<vmem>>, %arg4: memref<128x128xbf16, #tpu.memory_space<vmem>>, %arg5: memref<128x1024xbf16, #tpu.memory_space<vmem>>, %arg6: memref<512x9xbf16, #tpu.memory_space<vmem>>, %arg7: memref<1x9xf32, #tpu.memory_space<vmem>>, %arg8: memref<8x8xf32, #tpu.memory_space<vmem>>, %arg9: memref<64x8xf32, #tpu.memory_space<vmem>>, %arg10: memref<8x8xf32, #tpu.memory_space<vmem>>) attributes {dimension_semantics = [#tpu.dimension_semantics<parallel>], iteration_bounds = array<i64: 2>, scalar_prefetch = 0 : i64, scratch_operands = 0 : i64, tpu.core_type = #tpu.core_type<tc>, window_params = [{transform_indices = @transform_0, window_bounds = array<i64: 8, 128>}, {pipeline_mode = #tpu.pipeline_mode<synchronous>, transform_indices = @transform_1, window_bounds = array<i64: 128, 512>}, {pipeline_mode = #tpu.pipeline_mode<synchronous>, transform_indices = @transform_2, window_bounds = array<i64: 1, 512>}, {pipeline_mode = #tpu.pipeline_mode<synchronous>, transform_indices = @transform_3, window_bounds = array<i64: 128, 128>}, {pipeline_mode = #tpu.pipeline_mode<synchronous>, transform_indices = @transform_4, window_bounds = array<i64: 128, 1024>}, {pipeline_mode = #tpu.pipeline_mode<synchronous>, transform_indices = @transform_5, window_bounds = array<i64: 512, 9>}, {pipeline_mode = #tpu.pipeline_mode<synchronous>, transform_indices = @transform_6, window_bounds = array<i64: 1, 9>}, {transform_indices = @transform_7, window_bounds = array<i64: 8, 8>}, {transform_indices = @transform_8, window_bounds = array<i64: 64, 8>}, {transform_indices = @transform_9, window_bounds = array<i64: 8, 8>}]} {
    %c0 = arith.constant 0 : index
    %c0_0 = arith.constant 0 : index
    %0 = vector.load %arg1[%c0, %c0_0] : memref<8x128xf32, #tpu.memory_space<vmem>>, vector<8x128xf32>
    %1 = arith.truncf %0 : vector<8x128xf32> to vector<8x128xbf16>
    %c0_1 = arith.constant 0 : index
    %c0_2 = arith.constant 0 : index
    %2 = vector.load %arg2[%c0_1, %c0_2] : memref<128x512xbf16, #tpu.memory_space<vmem>>, vector<128x512xbf16>
    %cst = arith.constant dense<0.000000e+00> : vector<8x512xf32>
    %3 = tpu.matmul %1, %2, %cst {dimension_numbers = #tpu.dot_dimension_numbers<[1], [0], [0], [1], [0, 0, 1, 1], [], []>} : vector<8x128xbf16>, vector<128x512xbf16>, vector<8x512xf32> -> vector<8x512xf32>
    %c0_3 = arith.constant 0 : index
    %c0_4 = arith.constant 0 : index
    %4 = vector.load %arg3[%c0_3, %c0_4] : memref<1x512xf32, #tpu.memory_space<vmem>>, vector<1x512xf32>
    %5 = vector.broadcast %4 : vector<1x512xf32> to vector<8x512xf32>
    %6 = arith.addf %3, %5 : vector<8x512xf32>
    %7 = arith.truncf %6 : vector<8x512xf32> to vector<8x512xbf16>
    %8 = vector.extract_strided_slice %7 {offsets = [0, 0], sizes = [8, 128], strides = [1, 1]} : vector<8x512xbf16> to vector<8x128xbf16>
    %9 = vector.extract_strided_slice %7 {offsets = [0, 128], sizes = [8, 128], strides = [1, 1]} : vector<8x512xbf16> to vector<8x128xbf16>
    %10 = vector.extract_strided_slice %7 {offsets = [0, 256], sizes = [8, 128], strides = [1, 1]} : vector<8x512xbf16> to vector<8x128xbf16>
    %11 = vector.extract_strided_slice %7 {offsets = [0, 384], sizes = [8, 128], strides = [1, 1]} : vector<8x512xbf16> to vector<8x128xbf16>
    %c0_5 = arith.constant 0 : index
    %c0_6 = arith.constant 0 : index
    %12 = vector.load %arg6[%c0_5, %c0_6] : memref<512x9xbf16, #tpu.memory_space<vmem>>, vector<512x9xbf16>
    %cst_7 = arith.constant dense<0.000000e+00> : vector<8x9xf32>
    %13 = tpu.matmul %7, %12, %cst_7 {dimension_numbers = #tpu.dot_dimension_numbers<[1], [0], [0], [1], [0, 0, 1, 1], [], []>} : vector<8x512xbf16>, vector<512x9xbf16>, vector<8x9xf32> -> vector<8x9xf32>
    %c0_8 = arith.constant 0 : index
    %c0_9 = arith.constant 0 : index
    %14 = vector.load %arg7[%c0_8, %c0_9] : memref<1x9xf32, #tpu.memory_space<vmem>>, vector<1x9xf32>
    %15 = vector.broadcast %14 : vector<1x9xf32> to vector<8x9xf32>
    %16 = arith.addf %13, %15 : vector<8x9xf32>
    %17 = vector.extract_strided_slice %16 {offsets = [0, 0], sizes = [8, 8], strides = [1, 1]} : vector<8x9xf32> to vector<8x8xf32>
    %18 = vector.extract_strided_slice %16 {offsets = [0, 8], sizes = [8, 1], strides = [1, 1]} : vector<8x9xf32> to vector<8x1xf32>
    %c0_10 = arith.constant 0 : index
    %c0_11 = arith.constant 0 : index
    %19 = vector.load %arg4[%c0_10, %c0_11] : memref<128x128xbf16, #tpu.memory_space<vmem>>, vector<128x128xbf16>
    %cst_12 = arith.constant dense<0.000000e+00> : vector<8x128xf32>
    %20 = tpu.matmul %9, %19, %cst_12 {dimension_numbers = #tpu.dot_dimension_numbers<[1], [0], [0], [1], [0, 0, 1, 1], [], []>} : vector<8x128xbf16>, vector<128x128xbf16>, vector<8x128xf32> -> vector<8x128xf32>
    %21 = arith.truncf %20 : vector<8x128xf32> to vector<8x128xbf16>
    %cst_13 = arith.constant dense<0.000000e+00> : vector<8x8xf32>
    %22 = tpu.matmul %8, %21, %cst_13 {dimension_numbers = #tpu.dot_dimension_numbers<[1], [1], [0], [0], [0, 0, 1, 0], [], []>} : vector<8x128xbf16>, vector<8x128xbf16>, vector<8x8xf32> -> vector<8x8xf32>
    %23 = vector.broadcast %18 : vector<8x1xf32> to vector<8x8xf32>
    %24 = arith.addf %22, %23 : vector<8x8xf32>
    %c0_14 = arith.constant 0 : index
    %c0_15 = arith.constant 0 : index
    %25 = vector.load %arg8[%c0_14, %c0_15] : memref<8x8xf32, #tpu.memory_space<vmem>>, vector<8x8xf32>
    tpu.vector_store %arg8[%c0_14, %c0_15], %24 {strides = array<i32>} : memref<8x8xf32, #tpu.memory_space<vmem>>, vector<8x8xf32>,
    %c0_16 = arith.constant 0 : index
    %c0_17 = arith.constant 0 : index
    %26 = vector.load %arg5[%c0_16, %c0_17] : memref<128x1024xbf16, #tpu.memory_space<vmem>>, vector<128x1024xbf16>
    %cst_18 = arith.constant dense<0.000000e+00> : vector<8x1024xf32>
    %27 = tpu.matmul %11, %26, %cst_18 {dimension_numbers = #tpu.dot_dimension_numbers<[1], [0], [0], [1], [0, 0, 1, 1], [], []>} : vector<8x128xbf16>, vector<128x1024xbf16>, vector<8x1024xf32> -> vector<8x1024xf32>
    %28 = vector.shape_cast %27 : vector<8x1024xf32> to vector<64x128xf32>
    %29 = arith.truncf %28 : vector<64x128xf32> to vector<64x128xbf16>
    %cst_19 = arith.constant dense<0.000000e+00> : vector<64x8xf32>
    %30 = tpu.matmul %29, %10, %cst_19 {dimension_numbers = #tpu.dot_dimension_numbers<[1], [1], [0], [0], [0, 0, 1, 0], [], []>} : vector<64x128xbf16>, vector<8x128xbf16>, vector<64x8xf32> -> vector<64x8xf32>
    %31 = vector.shape_cast %30 : vector<64x8xf32> to vector<8x8x8xf32>
    %32 = vector.shape_cast %17 : vector<8x8xf32> to vector<8x8x1xf32>
    %33 = vector.broadcast %32 : vector<8x8x1xf32> to vector<8x8x8xf32>
    %34 = arith.addf %31, %33 : vector<8x8x8xf32>
    %35 = vector.shape_cast %34 : vector<8x8x8xf32> to vector<64x8xf32>
    %c0_20 = arith.constant 0 : index
    %c0_21 = arith.constant 0 : index
    %36 = vector.load %arg9[%c0_20, %c0_21] : memref<64x8xf32, #tpu.memory_space<vmem>>, vector<64x8xf32>
    tpu.vector_store %arg9[%c0_20, %c0_21], %35 {strides = array<i32>} : memref<64x8xf32, #tpu.memory_space<vmem>>, vector<64x8xf32>,
    %37 = tpu.iota {dimensions = array<i32: 1>} : vector<8x8xi32>
    %cst_22 = arith.constant dense<0xFF800000> : vector<8xf32>
    %38 = vector.multi_reduction <maximumf>, %24, %cst_22 [1] : vector<8x8xf32> to vector<8xf32>
    %39 = vector.shape_cast %38 : vector<8xf32> to vector<8x1xf32>
    %40 = vector.broadcast %39 : vector<8x1xf32> to vector<8x8xf32>
    %41 = arith.cmpf oeq, %24, %40 : vector<8x8xf32>
    %c8_i32 = arith.constant 8 : i32
    %42 = vector.broadcast %c8_i32 : i32 to vector<8x8xi32>
    %43 = arith.select %41, %37, %42 : vector<8x8xi1>, vector<8x8xi32>
    %cst_23 = arith.constant dense<2147483647> : vector<8xi32>
    %44 = vector.multi_reduction <minsi>, %43, %cst_23 [1] : vector<8x8xi32> to vector<8xi32>
    %45 = vector.shape_cast %44 : vector<8xi32> to vector<8x1xi32>
    %46 = vector.broadcast %45 : vector<8x1xi32> to vector<8x8xi32>
    %47 = arith.cmpi eq, %37, %46 : vector<8x8xi32>
    %48 = arith.extui %47 : vector<8x8xi1> to vector<8x8xi32>
    %49 = arith.sitofp %48 : vector<8x8xi32> to vector<8x8xf32>
    %50 = vector.shape_cast %49 : vector<8x8xf32> to vector<8x1x8xf32>
    %51 = vector.broadcast %50 : vector<8x1x8xf32> to vector<8x8x8xf32>
    %52 = arith.mulf %34, %51 : vector<8x8x8xf32>
    %cst_24 = arith.constant dense<0.000000e+00> : vector<8x8xf32>
    %53 = vector.multi_reduction <add>, %52, %cst_24 [2] : vector<8x8x8xf32> to vector<8x8xf32>
    %c0_25 = arith.constant 0 : index
    %c0_26 = arith.constant 0 : index
    %54 = vector.load %arg10[%c0_25, %c0_26] : memref<8x8xf32, #tpu.memory_space<vmem>>, vector<8x8xf32>
    tpu.vector_store %arg10[%c0_25, %c0_26], %53 {strides = array<i32>} : memref<8x8xf32, #tpu.memory_space<vmem>>, vector<8x8xf32>,
    return
  }
  func.func @transform_0(%arg0: i32) -> (i32, i32) {
    %c0_i32 = arith.constant 0 : i32
    %c0_i32_0 = arith.constant 0 : i32
    return %arg0, %c0_i32 : i32, i32
  }
  func.func @transform_1(%arg0: i32) -> (i32, i32) {
    %c0_i32 = arith.constant 0 : i32
    %c0_i32_0 = arith.constant 0 : i32
    %c0_i32_1 = arith.constant 0 : i32
    return %c0_i32, %c0_i32_0 : i32, i32
  }
  func.func @transform_2(%arg0: i32) -> (i32, i32) {
    %c0_i32 = arith.constant 0 : i32
    %c0_i32_0 = arith.constant 0 : i32
    %c0_i32_1 = arith.constant 0 : i32
    return %c0_i32, %c0_i32_0 : i32, i32
  }
  func.func @transform_3(%arg0: i32) -> (i32, i32) {
    %c0_i32 = arith.constant 0 : i32
    %c0_i32_0 = arith.constant 0 : i32
    %c0_i32_1 = arith.constant 0 : i32
    return %c0_i32, %c0_i32_0 : i32, i32
  }
  func.func @transform_4(%arg0: i32) -> (i32, i32) {
    %c0_i32 = arith.constant 0 : i32
    %c0_i32_0 = arith.constant 0 : i32
    %c0_i32_1 = arith.constant 0 : i32
    return %c0_i32, %c0_i32_0 : i32, i32
  }
  func.func @transform_5(%arg0: i32) -> (i32, i32) {
    %c0_i32 = arith.constant 0 : i32
    %c0_i32_0 = arith.constant 0 : i32
    %c0_i32_1 = arith.constant 0 : i32
    return %c0_i32, %c0_i32_0 : i32, i32
  }
  func.func @transform_6(%arg0: i32) -> (i32, i32) {
    %c0_i32 = arith.constant 0 : i32
    %c0_i32_0 = arith.constant 0 : i32
    %c0_i32_1 = arith.constant 0 : i32
    return %c0_i32, %c0_i32_0 : i32, i32
  }
  func.func @transform_7(%arg0: i32) -> (i32, i32) {
    %c0_i32 = arith.constant 0 : i32
    %c0_i32_0 = arith.constant 0 : i32
    return %arg0, %c0_i32 : i32, i32
  }
  func.func @transform_8(%arg0: i32) -> (i32, i32) {
    %c0_i32 = arith.constant 0 : i32
    %c0_i32_0 = arith.constant 0 : i32
    return %arg0, %c0_i32 : i32, i32
  }
  func.func @transform_9(%arg0: i32) -> (i32, i32) {
    %c0_i32 = arith.constant 0 : i32
    %c0_i32_0 = arith.constant 0 : i32
    return %arg0, %c0_i32 : i32, i32
  }
}

</mosaic_0001>

<bundles_post_ra>
// kernel: dp_forward.1
= control target key start
LH: loop header
LB: loop body
LE: loop exit
PB: predicated region body
PF: predicated region fallthrough
CT: control target
= control target key end

     0   :  { %s3987_s0 = inlined_call_operand.hbm [shape: f32[16,128], index: 0, kind: input, shape index: {}]   ;;  %s3988_s1 = inlined_call_operand.hbm [shape: bf16[128,512], index: 1, kind: input, shape index: {}]   ;;  %s3989_s2 = inlined_call_operand.hbm [shape: f32[1,512], index: 2, kind: input, shape index: {}]   ;;  %s3990_s3 = inlined_call_operand.hbm [shape: bf16[128,128], index: 3, kind: input, shape index: {}]   ;;  %s3991_s4 = inlined_call_operand.hbm [shape: bf16[128,1024], index: 4, kind: input, shape index: {}]   ;;  %s3992_s5 = inlined_call_operand.hbm [shape: bf16[512,9], index: 5, kind: input, shape index: {}]   ;;  %s3993_s6 = inlined_call_operand.hbm [shape: f32[1,9], index: 6, kind: input, shape index: {}]   ;;  %s3994_s7 = inlined_call_operand.hbm [shape: f32[16,8], index: 7, kind: output, shape index: {0}]   ;;  %s3995_s8 = inlined_call_operand.hbm [shape: f32[128,8], index: 8, kind: output, shape index: {1}]   ;;  %s3996_s9 = inlined_call_operand.hbm [shape: f32[16,8], index: 9, kind: output, shape index: {2}]  }
   0x1   :  { %4003 = sst [smem:[#allocation24_spill]] %s3987_s0 }
   0x2   :  { %4004 = sst [smem:[#allocation25_spill]] %s3988_s1 }
   0x3   :  { %4005 = sst [smem:[#allocation26_spill]] %s3989_s2 }
   0x4   :  { %4006 = sst [smem:[#allocation27_spill]] %s3990_s3 }
   0x5   :  { %4007 = sst [smem:[#allocation28_spill]] %s3996_s9 }
   0x6   :  { %15 = vsyncpa [#allocation3], 0 }
   0x7   :  { %17 = vsyncpa [#allocation3 + $0x1], 0 }
   0x8   :  { %18 = vsyncpa [#allocation6], 0 }
   0x9   :  { %19 = vsyncpa [#allocation9], 0 }
   0xa   :  { %20 = vsyncpa [#allocation12], 0 }
   0xb   :  { %21 = vsyncpa [#allocation4], 0 }
   0xc   :  { %23 = vsyncpa [#allocation4 + $0x1], 0 }
   0xd   :  { %24 = vsyncpa [#allocation16], 0 }
   0xe   :  { %26 = vsyncpa [#allocation16 + $0x1], 0  ;;  %s3429_s30 = smov 0   ;;  %s3431_s10 = smov 0  }
   0xf   :  { %s3433_s11 = smov 0   ;;  %s3435_s12 = smov 0  }
  0x10 LB: > { %s3356_s13 = smov [#allocation5]   ;;  %s3450_s15 = sadd.s32 4294967295, %s3354_s12   ;;  %s3354_s12 = sphi %s3435_s12, %s4037_s12   ;;  %s3350_s11 = sphi %s3433_s11, %s4036_s11   ;;  %s3346_s10 = sphi %s3431_s10, %s4035_s10   ;;  %s3342_s30 = sphi %s3429_s30, %s4034_s30  }
  0x11   : > { %s279_s14 = sshll.u32 %s3356_s13, 4  ;;  %p2534_p0 = scmp.ge.s32.totalorder %s3354_s12, 1  ;;  %s3455_s14 = int_to_ptr.vmem [resolvable:$true] %s279_s14 }
  0x12   : > { %p3998_p1 = scmp.eq.s32.totalorder %s3450_s15, 0  ;;  %p267_p2 = scmp.lt.s32.totalorder %s3354_s12, 3 }
  0x13   : > { %s3357_s17 = smov [#allocation8]   ;;  %s3358_s20 = smov [#allocation11]  }
  0x14   : > { %p3457_p3 = pnand %p2534_p0, %p267_p2  ;;  %s303_s18 = sshll.u32 %s3357_s17, 4  ;;  %s3470_s18 = int_to_ptr.vmem [resolvable:$true] %s303_s18 }
  0x15   : > { %s3472_s21 = sshll.u32 %s3358_s20, 4  ;;  %s4010_s1 = sld [smem:[#allocation25_spill]]  ;;  %s330_s21 = int_to_ptr.vmem [resolvable:$true] %s3472_s21 }
  0x16   : > { %s4008_s16 = scalar_select %p3457_p3, 1, 0 }
  0x17   : > { %p2831_p5 = pneg %p3457_p3 }
  0x19   : > { %p3466_p6 = pnand %p2831_p5, %p3998_p1 }
  0x1b   : > { %s3018_s24 = scalar_lea.hbm %s4010_s1, 4096  ;;  %p3482_p8 = pneg %p3466_p6 }
  0x1c   : > { %p3019_p7 = scmp.ne.s32.totalorder %s4010_s1, %s3018_s24  ;;  %p3025_p11 = scmp.lt.u32.totalorder %s3018_s24, %s4010_s1 }
  0x1e   : > { %p3021_p9 = pnand %p3482_p8, %p3019_p7 }
  0x20   : > { %p3022_p10 = pneg %p3021_p9 }
  0x22   : > { %p3027_p12 = pnand %p3025_p11, %p3022_p10 }
  0x24   : > { %3030 = shalt.err (!%p3027_p12)
}
  0x25   : > { %s3031_s13 = scalar_lea.vmem %s3455_s14, 4096  ;;  %p3039_p5 = scmp.lt.s32.totalorder %s3455_s14, %s3455_s14 }
  0x26   : > { %p3032_p13 = scmp.ne.s32.totalorder %s3455_s14, %s3031_s13  ;;  %p3040_p4 = scmp.lt.s32.totalorder %s3031_s13, %s3031_s13 }
  0x28   : > { %p3034_p0 = pnand %p3032_p13, %p3482_p8  ;;  %p3041_p7 = por %p3040_p4, %p3039_p5 }
  0x2a   : > { %p3035_p2 = pneg %p3034_p0 }
  0x2c   : > { %p3042_p9 = pnand %p3041_p7, %p3035_p2 }
  0x2e   : > { %3045 = shalt.err (!%p3042_p9)
}
  0x2f   : > { %s3359_s17 = smov 256   ;;  %s3360_s20 = smov 16  }
  0x30   : > { %2834 = dma.hbm_to_vmem [thread:$0]  (!%p3466_p6), %s4010_s1, 4096, %s3455_s14, [#allocation6], %s3359_s17, %s3359_s17, %s3360_s20  }
  0x31   : > { %s4012_s3 = sld [smem:[#allocation27_spill]] }
  0x37   : > { %s3046_s26 = scalar_lea.hbm %s4012_s3, 1024 }
  0x38   : > { %p3047_p4 = scmp.ne.s32.totalorder %s4012_s3, %s3046_s26  ;;  %p3053_p12 = scmp.lt.u32.totalorder %s3046_s26, %s4012_s3 }
  0x3a   : > { %p3049_p10 = pnand %p3047_p4, %p3482_p8 }
  0x3c   : > { %p3050_p11 = pneg %p3049_p10 }
  0x3e   : > { %p3055_p13 = pnand %p3053_p12, %p3050_p11 }
  0x40   : > { %3058 = shalt.err (!%p3055_p13)
}
  0x41   : > { %s3059_s14 = scalar_lea.vmem %s3470_s18, 1024  ;;  %p3067_p7 = scmp.lt.s32.totalorder %s3470_s18, %s3470_s18 }
  0x42   : > { %p3060_p0 = scmp.ne.s32.totalorder %s3470_s18, %s3059_s14  ;;  %p3068_p9 = scmp.lt.s32.totalorder %s3059_s14, %s3059_s14 }
  0x44   : > { %p3062_p2 = pnand %p3060_p0, %p3482_p8  ;;  %p3069_p4 = por %p3068_p9, %p3067_p7 }
  0x46   : > { %p3063_p5 = pneg %p3062_p2 }
  0x48   : > { %p3070_p10 = pnand %p3069_p4, %p3063_p5 }
  0x4a   : > { %3073 = shalt.err (!%p3070_p10)
}
  0x4b   : > { %s3361_s17 = smov 64   ;;  %s3362_s9 = smov 4  }
  0x4c   : > { %2840 = dma.hbm_to_vmem [thread:$0]  (!%p3466_p6), %s4012_s3, 1024, %s3470_s18, [#allocation9], %s3361_s17, %s3361_s17, %s3362_s9  }
  0x4d   : > { %s3074_s25 = scalar_lea.hbm %s3992_s5, 4096 }
  0x4e   : > { %p3075_p11 = scmp.ne.s32.totalorder %s3992_s5, %s3074_s25  ;;  %p3081_p0 = scmp.lt.u32.totalorder %s3074_s25, %s3992_s5 }
  0x50   : > { %p3077_p12 = pnand %p3075_p11, %p3482_p8 }
  0x52   : > { %p3078_p13 = pneg %p3077_p12 }
  0x54   : > { %p3083_p2 = pnand %p3081_p0, %p3078_p13 }
  0x56   : > { %3086 = shalt.err (!%p3083_p2)
}
  0x57   : > { %s3087_s14 = scalar_lea.vmem %s330_s21, 4096  ;;  %p3095_p4 = scmp.lt.s32.totalorder %s330_s21, %s330_s21 }
  0x58   : > { %p3088_p5 = scmp.ne.s32.totalorder %s330_s21, %s3087_s14  ;;  %p3096_p10 = scmp.lt.s32.totalorder %s3087_s14, %s3087_s14 }
  0x5a   : > { %p3090_p7 = pnand %p3088_p5, %p3482_p8  ;;  %p3097_p1 = por %p3096_p10, %p3095_p4 }
  0x5c   : > { %p3091_p9 = pneg %p3090_p7 }
  0x5e   : > { %p3098_p3 = pnand %p3097_p1, %p3091_p9 }
  0x60   : > { %3101 = shalt.err (!%p3098_p3)
}
  0x61   : > { %2846 = dma.hbm_to_vmem [thread:$0]  (!%p3466_p6), %s3992_s5, 4096, %s330_s21, [#allocation12], %s3361_s17, %s3361_s17, %s3362_s9  }
  0x62   : > { %s3363_s22 = smov [#allocation7]   ;;  %s3364_s24 = smov [#allocation10]  }
  0x63   : > { %s293_s23 = sshll.u32 %s3363_s22, 4  ;;  %s316_s25 = sshll.u32 %s3364_s24, 4  ;;  %s294_s23 = int_to_ptr.vmem [resolvable:$true] %s293_s23  ;;  %s317_s25 = int_to_ptr.vmem [resolvable:$true] %s316_s25 }
  0x64   : > { %s4013_s2 = sld [smem:[#allocation26_spill]] }
  0x6a   : > { %s3102_s29 = scalar_lea.hbm %s4013_s2, 64 }
  0x6b   : > { %p3103_p1 = scmp.ne.s32.totalorder %s4013_s2, %s3102_s29  ;;  %p3109_p12 = scmp.lt.u32.totalorder %s3102_s29, %s4013_s2 }
  0x6d   : > { %p3105_p3 = pnand %p3103_p1, %p3482_p8 }
  0x6f   : > { %p3106_p11 = pneg %p3105_p3 }
  0x71   : > { %p3111_p13 = pnand %p3109_p12, %p3106_p11 }
  0x73   : > { %3114 = shalt.err (!%p3111_p13)
}
  0x74   : > { %s3115_s21 = scalar_lea.vmem %s294_s23, 64  ;;  %p3123_p7 = scmp.lt.s32.totalorder %s294_s23, %s294_s23 }
  0x75   : > { %p3116_p0 = scmp.ne.s32.totalorder %s294_s23, %s3115_s21  ;;  %p3124_p9 = scmp.lt.s32.totalorder %s3115_s21, %s3115_s21 }
  0x77   : > { %p3118_p2 = pnand %p3116_p0, %p3482_p8  ;;  %p3125_p4 = por %p3124_p9, %p3123_p7 }
  0x79   : > { %p3119_p5 = pneg %p3118_p2 }
  0x7b   : > { %p3126_p10 = pnand %p3125_p4, %p3119_p5 }
  0x7d   : > { %3129 = shalt.err (!%p3126_p10)
}
  0x7e   : > { %2837 = dma.hbm_to_vmem [thread:$0]  (!%p3466_p6), %s4013_s2, 64, %s294_s23, [#allocation6]  }
  0x7f   : > { %s3130_s22 = scalar_lea.hbm %s3991_s4, 8192 }
  0x80   : > { %p3131_p1 = scmp.ne.s32.totalorder %s3991_s4, %s3130_s22  ;;  %p3137_p12 = scmp.lt.u32.totalorder %s3130_s22, %s3991_s4 }
  0x82   : > { %p3133_p3 = pnand %p3131_p1, %p3482_p8 }
  0x84   : > { %p3134_p11 = pneg %p3133_p3 }
  0x86   : > { %p3139_p13 = pnand %p3137_p12, %p3134_p11 }
  0x88   : > { %3142 = shalt.err (!%p3139_p13)
}
  0x89   : > { %s3143_s13 = scalar_lea.vmem %s317_s25, 8192  ;;  %p3151_p7 = scmp.lt.s32.totalorder %s317_s25, %s317_s25 }
  0x8a   : > { %p3144_p0 = scmp.ne.s32.totalorder %s317_s25, %s3143_s13  ;;  %p3152_p9 = scmp.lt.s32.totalorder %s3143_s13, %s3143_s13 }
  0x8c   : > { %p3146_p2 = pnand %p3144_p0, %p3482_p8  ;;  %p3153_p4 = por %p3152_p9, %p3151_p7 }
  0x8e   : > { %p3147_p5 = pneg %p3146_p2 }
  0x90   : > { %p3154_p10 = pnand %p3153_p4, %p3147_p5 }
  0x92   : > { %3157 = shalt.err (!%p3154_p10)
}
  0x93   : > { %s3365_s23 = smov 512   ;;  %s3366_s14 = smov 32  }
  0x94   : > { %2843 = dma.hbm_to_vmem [thread:$0]  (!%p3466_p6), %s3991_s4, 8192, %s317_s25, [#allocation9], %s3365_s23, %s3365_s23, %s3366_s14  }
  0x95   : > { %s3367_s17 = smov [#allocation13]   ;;  %s3158_s22 = scalar_lea.hbm %s3993_s6, 16 }
  0x96   : > { %s343_s9 = sshll.u32 %s3367_s17, 4  ;;  %p3159_p1 = scmp.ne.s32.totalorder %s3993_s6, %s3158_s22  ;;  %s344_s9 = int_to_ptr.vmem [resolvable:$true] %s343_s9 }
  0x97   : > { %p3165_p12 = scmp.lt.u32.totalorder %s3158_s22, %s3993_s6 }
  0x98   : > { %p3161_p3 = pnand %p3159_p1, %p3482_p8 }
  0x9a   : > { %p3162_p11 = pneg %p3161_p3 }
  0x9c   : > { %p3167_p13 = pnand %p3165_p12, %p3162_p11 }
  0x9e   : > { %3170 = shalt.err (!%p3167_p13)
}
  0x9f   : > { %s3171_s25 = scalar_lea.vmem %s344_s9, 16  ;;  %s3178_s13 = scalar_lea.vmem %s344_s9, 32 }
  0xa0   : > { %p3172_p0 = scmp.ne.s32.totalorder %s344_s9, %s3171_s25  ;;  %p3179_p7 = scmp.lt.s32.totalorder %s344_s9, %s344_s9 }
  0xa1   : > { %p3180_p9 = scmp.lt.s32.totalorder %s3178_s13, %s3171_s25 }
  0xa2   : > { %p3174_p2 = pnand %p3172_p0, %p3482_p8 }
  0xa3   : > { %p3181_p4 = por %p3180_p9, %p3179_p7 }
  0xa4   : > { %p3175_p5 = pneg %p3174_p2 }
  0xa6   : > { %p3182_p10 = pnand %p3181_p4, %p3175_p5 }
  0xa8   : > { %3185 = shalt.err (!%p3182_p10)
}
  0xa9   : > { %2849 = dma.hbm_to_vmem [thread:$0]  (!%p3466_p6), %s3993_s6, 16, %s344_s9, [#allocation12]  }
  0xaa   : > { %s4000_s19 = sadd.s32 4294967294, %s3354_s12   ;;  %s3601_s27 = sadd.s32 1, %s3354_s12  }
  0xab   : > { %s36_s18 = ssub.s32 %s3354_s12, %s3601_s27  ;;  %s39_s21 = sadd.s32 1, %s3350_s11 }
  0xac   : > { %p37_p8 = scmp.eq.s32.totalorder %s36_s18, 0  ;;  %p46_p1 = scmp.ne.s32.totalorder %s3350_s11, %s3346_s10 }
  0xad   : > { %p47_p3 = scmp.eq.s32.totalorder %s3354_s12, 0  ;;  %p52_p11 = scmp.ne.s32.totalorder %s3346_s10, %s3342_s30 }
  0xae   : > { %s3612_s17 = scalar_select %p37_p8, %s3350_s11, %s39_s21  }
  0xaf   : > { %p3614_p12 = por %p47_p3, %p46_p1  ;;  %p4015_p13 = scmp.eq.s32.totalorder %s3450_s15, 0 }
  0xb0   : > { %p202_p0 = scmp.eq.s32.totalorder %s3450_s15, 1  ;;  %p208_p2 = scmp.eq.s32.totalorder %s4000_s19, 1 }
  0xb1   : > { %p3620_p6 = por %p4015_p13, %p52_p11  ;;  %p2870_p5 = scmp.lt.s32.totalorder %s3354_s12, 2 }
  0xb2   : > { %s354_s20 = sand.u32 1, %s3350_s11   ;;  %p3629_p7 = por %p202_p0, %p46_p1 }
  0xb3   : > { %p3633_p9 = por %p208_p2, %p52_p11  ;;  %s2542_s26 = sshll.u32 %s354_s20, 3 }
  0xb4   : > { %s4017_s22 = scalar_select %p3629_p7, 1, 0 }
  0xb5   : > { %s4018_s24 = scalar_select %p3633_p9, 1, 0 }
  0xb6   : > { %s2543_s28 = sshll.u32 %s3354_s12, 7  ;;  %s4019_s0 = sld [smem:[#allocation24_spill]] }
  0xb7   : > { %s358_s23 = scalar_lea.vmem [#allocation2], %s2542_s26  ;;  %p3647_p4 = pnand %p2870_p5, %p3614_p12 }
  0xb8   : > { %s365_s14 = sshll.u32 %s358_s23, 4  ;;  %s355_s21 = scalar_lea.sflag [#allocation3], %s354_s20  ;;  %s3643_s14 = int_to_ptr.vmem [resolvable:$true] %s365_s14 }
  0xb9   : > { %p3188_p8 = pneg %p3647_p4 }
  0xbc   : > { %s3641_s13 = scalar_lea.hbm %s4019_s0, %s2543_s28  ;;  %s3191_s29 = scalar_lea.hbm %s4019_s0, 256 }
  0xbd   : > { %s3186_s19 = scalar_lea.hbm %s3641_s13, 128  ;;  %p3192_p11 = scmp.lt.u32.totalorder %s3641_s13, %s4019_s0 }
  0xbe   : > { %p3187_p10 = scmp.ne.s32.totalorder %s3641_s13, %s3186_s19  ;;  %p3193_p12 = scmp.lt.u32.totalorder %s3191_s29, %s3186_s19 }
  0xbf   : > { %p3195_p0 = scmp.lt.u32.totalorder %s3186_s19, %s3641_s13 }
  0xc0   : > { %p3189_p1 = pnand %p3188_p8, %p3187_p10  ;;  %p3194_p13 = por %p3193_p12, %p3192_p11 }
  0xc2   : > { %p3190_p3 = pneg %p3189_p1  ;;  %p3196_p2 = por %p3195_p0, %p3194_p13 }
  0xc4   : > { %p3197_p5 = pnand %p3196_p2, %p3190_p3 }
  0xc6   : > { %3200 = shalt.err (!%p3197_p5)
}
  0xc7   : > { %s3201_s20 = scalar_lea.vmem %s3643_s14, 128  ;;  %s3368_s23 = smov [#allocation2]  }
  0xc8   : > { %p3202_p10 = scmp.ne.s32.totalorder %s3643_s14, %s3201_s20  ;;  %s3206_s26 = sshll.u32 %s3368_s23, 4  ;;  %s3207_s26 = int_to_ptr.vmem [resolvable:$false] %s3206_s26 }
  0xc9   : > { %s3208_s28 = scalar_lea.vmem %s3207_s26, 256  ;;  %p3209_p7 = scmp.lt.s32.totalorder %s3643_s14, %s3207_s26 }
  0xca   : > { %p3204_p1 = pnand %p3202_p10, %p3188_p8  ;;  %p3210_p11 = scmp.lt.s32.totalorder %s3208_s28, %s3201_s20 }
  0xcc   : > { %p3205_p9 = pneg %p3204_p1  ;;  %p3211_p12 = por %p3210_p11, %p3209_p7 }
  0xce   : > { %p3212_p13 = pnand %p3211_p12, %p3205_p9 }
  0xd0   : > { %3215 = shalt.err (!%p3212_p13)
}
  0xd1   : > { %2853 = dma.hbm_to_vmem [thread:$0]  (!%p3647_p4), %s3641_s13, 128, %s3643_s14, %s355_s21  }
  0xd2   : > { %p4021_p3 = scmp.ne.s32.totalorder %s4008_s16, 0 }
  0xd3   : > { %s3679_s19 = sand.u32 (!%p4021_p3), 1, %s3346_s10  }
  0xd4   : > { %374 = sbr.rel (%p4021_p3) target bundleno = 1572 (0x624), region = 48  ;;  %s3682_s29 = sshll.u32 (!%p4021_p3), %s3679_s19, 3 }
  0xd5   : > { %s377_s1 = scalar_lea.sflag (!%p4021_p3), [#allocation3], %s3679_s19  ;;  %s380_s25 = scalar_lea.vmem (!%p4021_p3), [#allocation2], %s3682_s29 }
  0xdb   : > { %3317 = dma.done.wait (%p3620_p6), %s377_s1, 128  }
  0xdc   : > { %3319 = vsyncadd (%p3620_p6), %s377_s1, 4294967168  ;;  %p4022_p7 = scmp.eq.s32.totalorder %s3450_s15, 0 }
  0xde   : > { %3321 = dma.done.wait (%p4022_p7), [#allocation6], 4160   ;;  %p4023_p9 = pmov %p4022_p7 }
  0xdf   : > { %p4024_p4 = pmov %p4022_p7 }
  0xe0   : > { %3323 = vsyncadd (%p4023_p9), [#allocation6], 4294963136 }
  0xe1   : > { %3325 = dma.done.wait (%p4024_p4), [#allocation9], 9216   ;;  %p4025_p8 = pmov %p4024_p4 }
  0xe2   : > { %p4026_p0 = pmov %p4024_p4 }
  0xe3   : > { %3327 = vsyncadd (%p4025_p8), [#allocation9], 4294958080 }
  0xe4   : > { %3329 = dma.done.wait (%p4026_p0), [#allocation12], 4112   ;;  %p4027_p2 = pmov %p4026_p0 }
  0xe5   : > { %v3369_v0 = vmov 0   ;;  %v2930_v1 = vld [vmem:[#allocation5 + $0x4] ss:$16 sps:$4 sm:$0xff]   ;;  %v2932_v2 = vld [vmem:[#allocation5] ss:$16 sps:$4 sm:$0xff]   ;;  %vm3371_vm0 = vmmov 0  }
  0xe6   : > { %3331 = vsyncadd (%p4027_p2), [#allocation12], 4294963184  ;;  %699 = vmatprep.mubr.bf16.mxu0 %v3369_v0  ;;  %740 = vmatprep.mubr.bf16.mxu1 %v3369_v0  ;;  %v2933_v3 = vld [vmem:[#allocation5 + $0xc] ss:$16 sps:$4 sm:$0xff]   ;;  %v2935_v4 = vld [vmem:[#allocation5 + $0x8] ss:$16 sps:$4 sm:$0xff]  }
  0xe7   : > { %667 = vmatprep.subr.bf16.mxu0 %v2930_v1  ;;  %v2936_v5 = vld [vmem:[#allocation5 + $0x24] ss:$16 sps:$4 sm:$0xff]   ;;  %v2938_v6 = vld [vmem:[#allocation5 + $0x20] ss:$16 sps:$4 sm:$0xff]   ;;  %708 = vmatprep.subr.bf16.mxu1 %v2933_v3  ;;  %v2939_v7 = vld [vmem:[#allocation5 + $0x2c] ss:$16 sps:$4 sm:$0xff]  }
  0xe8   : > { %668 = vmatpush1.bf16.msra.mxu0 %v2932_v2  ;;  %709 = vmatpush1.bf16.msra.mxu1 %v2935_v4  ;;  %v2941_v8 = vld [vmem:[#allocation5 + $0x28] ss:$16 sps:$4 sm:$0xff]   ;;  %v2942_v9 = vld [vmem:[#allocation5 + $0x44] ss:$16 sps:$4 sm:$0xff]   ;;  %v2944_v10 = vld [vmem:[#allocation5 + $0x40] ss:$16 sps:$4 sm:$0xff]  }
  0xe9   : > { %669 = vmatprep.subr.bf16.mxu0 %v2936_v5  ;;  %710 = vmatprep.subr.bf16.mxu1 %v2939_v7  ;;  %v2945_v11 = vld [vmem:[#allocation5 + $0x4c] ss:$16 sps:$4 sm:$0xff]   ;;  %v2948_v12 = vld [vmem:[#allocation5 + $0x64] ss:$16 sps:$4 sm:$0xff]   ;;  %v2947_v13 = vld [vmem:[#allocation5 + $0x48] ss:$16 sps:$4 sm:$0xff]   ;;  %v487_v5 = vlaneseq }
  0xea   : > { %v2951_v14 = vld [vmem:[#allocation5 + $0x6c] ss:$16 sps:$4 sm:$0xff]   ;;  %v2950_v15 = vld [vmem:[#allocation5 + $0x60] ss:$16 sps:$4 sm:$0xff]   ;;  %v2954_v16 = vld [vmem:[#allocation5 + $0x84] ss:$16 sps:$4 sm:$0xff]  }
  0xeb   : > { %v2953_v17 = vld [vmem:[#allocation5 + $0x68] ss:$16 sps:$4 sm:$0xff]   ;;  %v2957_v18 = vld [vmem:[#allocation5 + $0x8c] ss:$16 sps:$4 sm:$0xff]   ;;  %v2956_v19 = vld [vmem:[#allocation5 + $0x80] ss:$16 sps:$4 sm:$0xff]  }
  0xec   : > { %670 = vmatpush1.bf16.msra.mxu0 %v2938_v6  ;;  %711 = vmatpush1.bf16.msra.mxu1 %v2941_v8  ;;  %v2960_v20 = vld [vmem:[#allocation5 + $0xa4] ss:$16 sps:$4 sm:$0xff]   ;;  %v2959_v21 = vld [vmem:[#allocation5 + $0x88] ss:$16 sps:$4 sm:$0xff]   ;;  %v2963_v22 = vld [vmem:[#allocation5 + $0xac] ss:$16 sps:$4 sm:$0xff]  }
  0xed   : > { %671 = vmatprep.subr.bf16.mxu0 %v2942_v9  ;;  %712 = vmatprep.subr.bf16.mxu1 %v2945_v11  ;;  %v2962_v23 = vld [vmem:[#allocation5 + $0xa0] ss:$16 sps:$4 sm:$0xff]   ;;  %v2966_v24 = vld [vmem:[#allocation5 + $0xc4] ss:$16 sps:$4 sm:$0xff]   ;;  %v2965_v25 = vld [vmem:[#allocation5 + $0xa8] ss:$16 sps:$4 sm:$0xff]  }
  0xee   : > { %v2968_v26 = vld [vmem:[#allocation5 + $0xc0] ss:$16 sps:$4 sm:$0xff]   ;;  %v2969_v27 = vld [vmem:[#allocation5 + $0xcc] ss:$16 sps:$4 sm:$0xff]   ;;  %v2971_v28 = vld [vmem:[#allocation5 + $0xc8] ss:$16 sps:$4 sm:$0xff]  }
  0xef   : > { %v2972_v29 = vld [vmem:[#allocation5 + $0xe4] ss:$16 sps:$4 sm:$0xff]   ;;  %v2974_v30 = vld [vmem:[#allocation5 + $0xe0] ss:$16 sps:$4 sm:$0xff]   ;;  %v2975_v31 = vld [vmem:[#allocation5 + $0xec] ss:$16 sps:$4 sm:$0xff]  }
  0xf0   : > { %672 = vmatpush1.bf16.msra.mxu0 %v2944_v10  ;;  %713 = vmatpush1.bf16.msra.mxu1 %v2947_v13  ;;  %v2977_v32 = vld [vmem:[#allocation5 + $0xe8] ss:$16 sps:$4 sm:$0xff]   ;;  %v2981_v38 = vld [vmem:[#allocation11 + $0x48] sm:$0xff]   ;;  %v2989_v46 = vld [vmem:[#allocation11 + $0x58] sm:$0xff]   ;;  %v3370_v4 = vmov 0.0   ;;  %v3709_v6 = vshrl.u32 %v487_v5, 7 }
  0xf1   : > { %673 = vmatprep.subr.bf16.mxu0 %v2948_v12  ;;  %714 = vmatprep.subr.bf16.mxu1 %v2951_v14  ;;  %v451_v33 = vld [vmem:[%s380_s25] sm:$0xff]  ;;  %v2978_v34 = vld [vmem:[#allocation11 + $0x40] sm:$0xff]   ;;  %v485_v8 = vld [vmem:[#allocation7] sm:$0xf]  ;;  %vm1246_vm1 = vcmask 64512   ;;  %s4002_s16 = scalar_lea.vmem [#allocation14], %s3682_s29 }
  0xf2   : > { %v2979_v35 = vld [vmem:[#allocation11] sm:$0xff]   ;;  %v452_v36 = vpack.c.bf16 %v451_v33, %v451_v33  ;;  %v2983_v40 = vld [vmem:[#allocation11 + $0x8] sm:$0xff]   ;;  %v2985_v42 = vld [vmem:[#allocation11 + $0x50] sm:$0xff]   ;;  %v3712_v7 = vsub.s32 0, %v3709_v6  ;;  %v493_v9 = vsub.s32 1, %v3709_v6  ;;  %v497_v10 = vsub.s32 2, %v3709_v6 }
  0xf3   : > { %v2980_v37 = vld [vmem:[#allocation11 + $0xc0] sm:$0xff]   ;;  %v2984_v41 = vld [vmem:[#allocation11 + $0xc8] sm:$0xff]   ;;  %v2987_v44 = vld [vmem:[#allocation11 + $0x10] sm:$0xff]   ;;  %v501_v11 = vsub.s32 3, %v3709_v6  ;;  %s2553_s9 = sshll.u32 %s3679_s19, 6  ;;  %s2297_s14 = sand.u32 1, %s3450_s15  }
  0xf4   : > { %674 = vmatpush1.bf16.msra.mxu0 %v2950_v15  ;;  %715 = vmatpush1.bf16.msra.mxu1 %v2953_v17  ;;  %v2982_v39 = vld [vmem:[#allocation11 + $0x80] sm:$0xff]   ;;  %v2986_v43 = vld [vmem:[#allocation11 + $0x88] sm:$0xff]   ;;  %v2988_v45 = vld [vmem:[#allocation11 + $0xd0] sm:$0xff]   ;;  %v490_v12 = vrot.slane %v485_v8, %v3712_v7  ;;  %v494_v13 = vrot.slane %v485_v8, %v493_v9  ;;  %v498_v14 = vrot.slane %v485_v8, %v497_v10  ;;  %s3824_s13 = scalar_lea.vmem [#allocation15], %s2553_s9  ;;  %s2702_s18 = sshll.u32 %s3450_s15, 10 }
  0xf5   : > { %675 = vmatprep.subr.bf16.mxu0 %v2954_v16  ;;  %716 = vmatprep.subr.bf16.mxu1 %v2957_v18  ;;  %v2990_v47 = vld [vmem:[#allocation11 + $0x90] sm:$0xff]   ;;  %v2991_v48 = vld [vmem:[#allocation11 + $0x18] sm:$0xff]   ;;  %v2993_v50 = vld [vmem:[#allocation11 + $0x60] sm:$0xff]   ;;  %v502_v16 = vrot.slane %v485_v8, %v501_v11  ;;  %s3875_s23 = scalar_lea.hbm %s3995_s8, %s2702_s18  ;;  %s2329_s26 = sshll.u32 %s3824_s13, 4  ;;  %s3878_s26 = int_to_ptr.vmem [resolvable:$true] %s2329_s26 }
  0xf6   : > { %v2992_v49 = vld [vmem:[#allocation11 + $0xd8] sm:$0xff]   ;;  %v2995_v52 = vld [vmem:[#allocation11 + $0x20] sm:$0xff]   ;;  %v2997_v54 = vld [vmem:[#allocation11 + $0x68] sm:$0xff]   ;;  %s3880_s28 = scalar_lea.sflag [#allocation16], %s2297_s14  ;;  %s3216_s1 = scalar_lea.vmem %s3878_s26, 1024 }
  0xf7   : > { %v2994_v51 = vld [vmem:[#allocation11 + $0x98] sm:$0xff]   ;;  %v2996_v53 = vld [vmem:[#allocation11 + $0xe0] sm:$0xff]   ;;  %v3000_v56 = vld [vmem:[#allocation11 + $0xe8] sm:$0xff]   ;;  %p3217_p6 = scmp.ne.s32.totalorder %s3878_s26, %s3216_s1  ;;  %p4028_p5 = scmp.ne.s32.totalorder %s4017_s22, 0 }
  0xf8   : > { %676 = vmatpush1.bf16.msra.mxu0 %v2956_v19  ;;  %717 = vmatpush1.bf16.msra.mxu1 %v2959_v21  ;;  %v2998_v55 = vld [vmem:[#allocation11 + $0xa0] sm:$0xff]   ;;  %v2999_v57 = vld [vmem:[#allocation11 + $0x28] sm:$0xff]   ;;  %v3001_v58 = vld [vmem:[#allocation11 + $0x70] sm:$0xff]   ;;  %s3374_s25 = smov [#allocation15]  }
  0xf9   : > { %677 = vmatprep.subr.bf16.mxu0 %v2960_v20  ;;  %718 = vmatprep.subr.bf16.mxu1 %v2963_v22  ;;  %v3002_v59 = vld [vmem:[#allocation11 + $0xa8] sm:$0xff]   ;;  %v3003_v60 = vld [vmem:[#allocation11 + $0x30] sm:$0xff]   ;;  %v3005_v62 = vld [vmem:[#allocation11 + $0x78] sm:$0xff]   ;;  %p3218_p10 = pnand %p3217_p6, %p4028_p5  ;;  %s3220_s9 = sshll.u32 %s3374_s25, 4  ;;  %s3221_s9 = int_to_ptr.vmem [resolvable:$false] %s3220_s9 }
  0xfa   : > { %v3004_v61 = vld [vmem:[#allocation11 + $0xf0] sm:$0xff]   ;;  %v3007_v1 = vld [vmem:[#allocation11 + $0x38] sm:$0xff]   ;;  %v3011_v33 = vld [vmem:[#allocation8 + $0x8] sm:$0xff]   ;;  %p3223_p11 = scmp.lt.s32.totalorder %s3878_s26, %s3221_s9 }
  0xfb   : > { %v3006_v63 = vld [vmem:[#allocation11 + $0xb0] sm:$0xff]   ;;  %v3008_v2 = vld [vmem:[#allocation11 + $0xf8] sm:$0xff]   ;;  %v1305_v8 = vld [vmem:[#allocation10 + $0x1c8] sm:$0xff]  ;;  %p3219_p1 = pneg %p3218_p10 }
  0xfc   : > { %678 = vmatpush1.bf16.msra.mxu0 %v2962_v23  ;;  %719 = vmatpush1.bf16.msra.mxu1 %v2965_v25  ;;  %v3009_v3 = vld [vmem:[#allocation11 + $0xb8] sm:$0xff]  }
  0xfd   : > { %679 = vmatprep.subr.bf16.mxu0 %v2966_v24  ;;  %720 = vmatprep.subr.bf16.mxu1 %v2969_v27  ;;  %v3010_v27 = vld [vmem:[#allocation8] sm:$0xff]  }
 0x100   : > { %680 = vmatpush1.bf16.msra.mxu0 %v2968_v26  ;;  %721 = vmatpush1.bf16.msra.mxu1 %v2971_v28 }
 0x101   : > { %681 = vmatprep.subr.bf16.mxu0 %v2972_v29  ;;  %722 = vmatprep.subr.bf16.mxu1 %v2975_v31 }
 0x104   : > { %682 = vmatpush1.bf16.msra.mxu0 %v2974_v30  ;;  %723 = vmatpush1.bf16.msra.mxu1 %v2977_v32 }
 0x105   : > { %2703 = vmatprep.subr.bf16.mxu0 %v2978_v34  ;;  %2725 = vmatprep.subr.bf16.mxu1 %v2980_v37  ;;  %v3012_v34 = vld [vmem:[#allocation8 + $0x10] sm:$0xff]   ;;  %v3015_v37 = vld [vmem:[#allocation8 + $0x28] sm:$0xff]  }
 0x107   : > { %700 = vmatmul.mubr.bf16.vlgmr.msra.gmra.mrb[0].mxu0 %v452_v36  ;;  %741 = vmatmul.mubr.bf16.vlgmr.msra.gmra.mrb[0].mxu1 %v452_v36  ;;  %v3014_v36 = vld [vmem:[#allocation8 + $0x20] sm:$0xff]  }
 0x108   : > { %2704 = vmatpush3.bf16.msra.mxu0 %v2979_v35  ;;  %2726 = vmatpush3.bf16.msra.mxu1 %v2982_v39  ;;  %v3013_v35 = vld [vmem:[#allocation8 + $0x18] sm:$0xff]   ;;  %v1249_v39 = vld [vmem:[#allocation10 + $0x8] sm:$0xff] }
 0x109   : > { %2705 = vmatprep.subr.bf16.mxu0 %v2981_v38  ;;  %2727 = vmatprep.subr.bf16.mxu1 %v2984_v41  ;;  %v3016_v38 = vld [vmem:[#allocation8 + $0x30] sm:$0xff]   ;;  %v3017_v41 = vld [vmem:[#allocation8 + $0x38] sm:$0xff]  }
 0x10c   : > { %2706 = vmatpush3.bf16.msra.mxu0 %v2983_v40  ;;  %2728 = vmatpush3.bf16.msra.mxu1 %v2986_v43  ;;  %v1253_v40 = vld [vmem:[#allocation10 + $0x28] sm:$0xff] }
 0x10d   : > { %2707 = vmatprep.subr.bf16.mxu0 %v2985_v42  ;;  %2729 = vmatprep.subr.bf16.mxu1 %v2988_v45  ;;  %v2631_v42 = vcombine.high %v1249_v39, %v1253_v40  ;;  %v1257_v43 = vld [vmem:[#allocation10 + $0x48] sm:$0xff]  ;;  %v2630_v45 = vcombine.low %v1249_v39, %v1253_v40  ;;  %v1295_v39 = vld [vmem:[#allocation10 + $0x178] sm:$0xff] }
 0x110   : > { %2708 = vmatpush3.bf16.msra.mxu0 %v2987_v44  ;;  %2730 = vmatpush3.bf16.msra.mxu1 %v2990_v47  ;;  %v1261_v44 = vld [vmem:[#allocation10 + $0x68] sm:$0xff] }
 0x111   : > { %2709 = vmatprep.subr.bf16.mxu0 %v2989_v46  ;;  %2731 = vmatprep.subr.bf16.mxu1 %v2992_v49  ;;  %v2639_v46 = vcombine.high %v1257_v43, %v1261_v44  ;;  %v1265_v47 = vld [vmem:[#allocation10 + $0x88] sm:$0xff]  ;;  %v2638_v49 = vcombine.low %v1257_v43, %v1261_v44  ;;  %v1303_v43 = vld [vmem:[#allocation10 + $0x1b8] sm:$0xff] }
 0x114   : > { %2710 = vmatpush3.bf16.msra.mxu0 %v2991_v48  ;;  %2732 = vmatpush3.bf16.msra.mxu1 %v2994_v51  ;;  %v1269_v48 = vld [vmem:[#allocation10 + $0xa8] sm:$0xff] }
 0x115   : > { %2711 = vmatprep.subr.bf16.mxu0 %v2993_v50  ;;  %2733 = vmatprep.subr.bf16.mxu1 %v2996_v53  ;;  %v2647_v50 = vcombine.high %v1265_v47, %v1269_v48  ;;  %v1273_v51 = vld [vmem:[#allocation10 + $0xc8] sm:$0xff]  ;;  %v2646_v53 = vcombine.low %v1265_v47, %v1269_v48  ;;  %v1311_v47 = vld [vmem:[#allocation10 + $0x1f8] sm:$0xff] }
 0x118   : > { %2712 = vmatpush3.bf16.msra.mxu0 %v2995_v52  ;;  %2734 = vmatpush3.bf16.msra.mxu1 %v2998_v55  ;;  %v1277_v52 = vld [vmem:[#allocation10 + $0xe8] sm:$0xff] }
 0x119   : > { %2713 = vmatprep.subr.bf16.mxu0 %v2997_v54  ;;  %2735 = vmatprep.subr.bf16.mxu1 %v3000_v56  ;;  %v2655_v54 = vcombine.high %v1273_v51, %v1277_v52  ;;  %v1281_v55 = vld [vmem:[#allocation10 + $0x108] sm:$0xff] }
 0x11a   : > { %v1285_v56 = vld [vmem:[#allocation10 + $0x128] sm:$0xff] }
 0x11c   : > { %2714 = vmatpush3.bf16.msra.mxu0 %v2999_v57  ;;  %2736 = vmatpush3.bf16.msra.mxu1 %v3002_v59  ;;  %v2654_v57 = vcombine.low %v1273_v51, %v1277_v52  ;;  %v1289_v59 = vld [vmem:[#allocation10 + $0x148] sm:$0xff]  ;;  %v3372_v51 = vmov 8  }
 0x11d   : > { %2715 = vmatprep.subr.bf16.mxu0 %v3001_v58  ;;  %2737 = vmatprep.subr.bf16.mxu1 %v3004_v61  ;;  %v2663_v58 = vcombine.high %v1281_v55, %v1285_v56  ;;  %v2662_v61 = vcombine.low %v1281_v55, %v1285_v56 }
 0x11e   : > { %2929 = vset.pattern.permute.xlu0 %v3372_v51 }
 0x120   : > { %2716 = vmatpush3.bf16.msra.mxu0 %v3003_v60  ;;  %2738 = vmatpush3.bf16.msra.mxu1 %v3006_v63  ;;  %v1293_v60 = vld [vmem:[#allocation10 + $0x168] sm:$0xff] }
 0x121   : > { %2717 = vmatprep.subr.bf16.mxu0 %v3005_v62  ;;  %2739 = vmatprep.subr.bf16.mxu1 %v3008_v2  ;;  %v2671_v62 = vcombine.high %v1289_v59, %v1293_v60  ;;  %v1297_v63 = vld [vmem:[#allocation10 + $0x188] sm:$0xff]  ;;  %v2670_v2 = vcombine.low %v1289_v59, %v1293_v60 }
 0x124   : > { %2718 = vmatpush3.bf16.msra.mxu0 %v3007_v1  ;;  %2740 = vmatpush3.bf16.msra.mxu1 %v3009_v3  ;;  %v1301_v1 = vld [vmem:[#allocation10 + $0x1a8] sm:$0xff] }
 0x125   : > { %2763 = vmatprep.subr.bf16.mxu0 %v3370_v4  ;;  %2783 = vmatprep.subr.bf16.mxu1 %v3370_v4  ;;  %v2679_v3 = vcombine.high %v1297_v63, %v1301_v1 }
 0x1da   : > { %v701_v15 = vpop.f32.mrb[0].mxu0  ;;  %v742_v21 = vpop.f32.mrb[0].mxu1 }
 0x1db   : > { %v702_v17 = vadd.f32 %v701_v15, %v490_v12  ;;  %v703_v18 = vpop.f32.mrb[1].mxu0  ;;  %v743_v22 = vadd.f32 %v742_v21, %v498_v14  ;;  %v744_v24 = vpop.f32.mrb[1].mxu1  ;;  %v1309_v12 = vld [vmem:[#allocation10 + $0x1e8] sm:$0xff]  ;;  %v1251_v15 = vld [vmem:[#allocation10 + $0x18] sm:$0xff] }
 0x1dc   : > { %v704_v19 = vadd.f32 %v703_v18, %v494_v13  ;;  %v705_v20 = vpop.f32.mrb[2].mxu0  ;;  %v745_v26 = vadd.f32 %v744_v24, %v502_v16  ;;  %v746_v28 = vpop.f32.mrb[2].mxu1  ;;  %v2678_v13 = vcombine.low %v1297_v63, %v1301_v1  ;;  %v2687_v14 = vcombine.high %v1305_v8, %v1309_v12  ;;  %v1255_v16 = vld [vmem:[#allocation10 + $0x38] sm:$0xff] }
 0x1dd   : > { %v706_v23 = vpop.f32.mrb[3].mxu0  ;;  %v3724_v29 = vpack.c.bf16 %v702_v17, %v702_v17  ;;  %v3726_v30 = vpack.c.bf16 %v743_v22, %v743_v22  ;;  %v747_v31 = vpop.f32.mrb[3].mxu1  ;;  %v2686_v17 = vcombine.low %v1305_v8, %v1309_v12  ;;  %v2635_v18 = vcombine.high %v1251_v15, %v1255_v16  ;;  %v1263_v20 = vld [vmem:[#allocation10 + $0x78] sm:$0xff] }
 0x1de   : > { %v750_v25 = vpack.c.bf16 %v704_v19, %v704_v19  ;;  %v3728_v32 = vpack.c.bf16 %v745_v26, %v745_v26  ;;  %v1259_v19 = vld [vmem:[#allocation10 + $0x58] sm:$0xff]  ;;  %v2634_v21 = vcombine.low %v1251_v15, %v1255_v16 }
 0x1df   : > { %v2643_v22 = vcombine.high %v1259_v19, %v1263_v20  ;;  %v1267_v23 = vld [vmem:[#allocation10 + $0x98] sm:$0xff] }
 0x1e0   : > { %1048 = vmatprep.mubr.bf16.mxu0 %v750_v25  ;;  %1088 = vmatprep.mubr.bf16.mxu1 %v3728_v32  ;;  %v1271_v24 = vld [vmem:[#allocation10 + $0xb8] sm:$0xff] }
 0x1e1   : > { %1049 = vmatmul.mubr.bf16.vlgmr.msra.gmra.mrb[4].mxu0 %v3724_v29  ;;  %1089 = vmatmul.mubr.bf16.vlgmr.msra.gmra.mrb[4].mxu1 %v3726_v30  ;;  %v2651_v26 = vcombine.high %v1267_v23, %v1271_v24  ;;  %v1279_v28 = vld [vmem:[#allocation10 + $0xf8] sm:$0xff]  ;;  %v2650_v31 = vcombine.low %v1267_v23, %v1271_v24 }
 0x1e2   : > { %2764 = vmatpush3.bf16.msra.mxu0 %v3010_v27  ;;  %2779 = vmatprep.mubr.msk.bf16.mxu0 %vm3371_vm0, %v3370_v4  ;;  %v1275_v27 = vld [vmem:[#allocation10 + $0xd8] sm:$0xff] }
 0x1e3   : > { %2765 = vmatprep.subr.bf16.mxu0 %v3370_v4  ;;  %2785 = vmatprep.mubr.msk.bf16.mxu1 %vm3371_vm0, %v3370_v4 }
 0x1e6   : > { %2766 = vmatpush3.bf16.msra.mxu0 %v3011_v33  ;;  %v2659_v33 = vcombine.high %v1275_v27, %v1279_v28 }
 0x1e7   : > { %2767 = vmatprep.subr.bf16.mxu0 %v3370_v4 }
 0x1ea   : > { %2768 = vmatpush3.bf16.msra.mxu0 %v3012_v34  ;;  %v1283_v34 = vld [vmem:[#allocation10 + $0x118] sm:$0xff] }
 0x1eb   : > { %2769 = vmatprep.subr.bf16.mxu0 %v3370_v4 }
 0x1ee   : > { %2770 = vmatpush3.bf16.msra.mxu0 %v3013_v35  ;;  %v1287_v35 = vld [vmem:[#allocation10 + $0x138] sm:$0xff] }
 0x1ef   : > { %2771 = vmatprep.subr.bf16.mxu0 %v3370_v4  ;;  %v2666_v40 = vcombine.low %v1283_v34, %v1287_v35 }
 0x1f2   : > { %2772 = vmatpush3.bf16.msra.mxu0 %v3014_v36  ;;  %v2658_v36 = vcombine.low %v1275_v27, %v1279_v28 }
 0x1f3   : > { %2773 = vmatprep.subr.bf16.mxu0 %v3370_v4 }
 0x1f6   : > { %2774 = vmatpush3.bf16.msra.mxu0 %v3015_v37  ;;  %v2667_v37 = vcombine.high %v1283_v34, %v1287_v35 }
 0x1f7   : > { %2775 = vmatprep.subr.bf16.mxu0 %v3370_v4 }
 0x1fa   : > { %2776 = vmatpush3.bf16.msra.mxu0 %v3016_v38  ;;  %v1291_v38 = vld [vmem:[#allocation10 + $0x158] sm:$0xff] }
 0x1fb   : > { %2777 = vmatprep.subr.bf16.mxu0 %v3370_v4  ;;  %v2674_v44 = vcombine.low %v1291_v38, %v1295_v39 }
 0x1fe   : > { %2778 = vmatpush3.bf16.msra.mxu0 %v3017_v41  ;;  %v2675_v41 = vcombine.high %v1291_v38, %v1295_v39  ;;  %v1296_v39 = vld [vmem:[#allocation10 + $0x180] sm:$0xff] }
 0x1ff   : > { %1673 = vmatprep.subr.bf16.mxu0 %v2631_v42  ;;  %v1299_v42 = vld [vmem:[#allocation10 + $0x198] sm:$0xff] }
 0x200   : > { %v2682_v48 = vcombine.low %v1299_v42, %v1303_v43 }
 0x201   : > { %2780 = vmatmul.mubr.bf16.vlgmr.msra.gmra.mrb[8].mxu0 %v750_v25  ;;  %v2642_v25 = vcombine.low %v1259_v19, %v1263_v20 }
 0x202   : > { %1674 = vmatpush1.bf16.msra.mxu0 %v2630_v45  ;;  %1705 = vmatprep.mubr.bf16.mxu0 %v3369_v0  ;;  %v2683_v45 = vcombine.high %v1299_v42, %v1303_v43  ;;  %v1304_v43 = vld [vmem:[#allocation10 + $0x1c0] sm:$0xff] }
 0x203   : > { %1675 = vmatprep.subr.bf16.mxu0 %v2639_v46  ;;  %v1307_v46 = vld [vmem:[#allocation10 + $0x1d8] sm:$0xff] }
 0x206   : > { %1676 = vmatpush1.bf16.msra.mxu0 %v2638_v49  ;;  %v2691_v49 = vcombine.high %v1307_v46, %v1311_v47 }
 0x207   : > { %1677 = vmatprep.subr.bf16.mxu0 %v2647_v50  ;;  %v2690_v50 = vcombine.low %v1307_v46, %v1311_v47 }
 0x20a   : > { %1678 = vmatpush1.bf16.msra.mxu0 %v2646_v53  ;;  %v2587_v53 = vld [vmem:[#allocation13] ss:$0 sm:$0xff] }
 0x20b   : > { %1679 = vmatprep.subr.bf16.mxu0 %v2655_v54 }
 0x20e   : > { %1680 = vmatpush1.bf16.msra.mxu0 %v2654_v57 }
 0x20f   : > { %1681 = vmatprep.subr.bf16.mxu0 %v2663_v58 }
 0x212   : > { %1682 = vmatpush1.bf16.msra.mxu0 %v2662_v61 }
 0x213   : > { %1683 = vmatprep.subr.bf16.mxu0 %v2671_v62 }
 0x216   : > { %1684 = vmatpush1.bf16.msra.mxu0 %v2670_v2  ;;  %v1248_v2 = vld [vmem:[#allocation10] sm:$0xff] }
 0x217   : > { %1685 = vmatprep.subr.bf16.mxu0 %v2679_v3  ;;  %v1252_v3 = vld [vmem:[#allocation10 + $0x20] sm:$0xff] }
 0x218   : > { %v2629_v12 = vcombine.high %v1248_v2, %v1252_v3  ;;  %v2628_v19 = vcombine.low %v1248_v2, %v1252_v3  ;;  %v1274_v3 = vld [vmem:[#allocation10 + $0xd0] sm:$0xff] }
 0x21a   : > { %1686 = vmatpush1.bf16.msra.mxu0 %v2678_v13 }
 0x21b   : > { %1687 = vmatprep.subr.bf16.mxu0 %v2687_v14 }
 0x21e   : > { %1688 = vmatpush1.bf16.msra.mxu0 %v2686_v17  ;;  %v1256_v17 = vld [vmem:[#allocation10 + $0x40] sm:$0xff] }
 0x21f   : > { %1755 = vmatprep.subr.bf16.mxu0 %v2635_v18  ;;  %v1260_v18 = vld [vmem:[#allocation10 + $0x60] sm:$0xff] }
 0x220   : > { %v2637_v20 = vcombine.high %v1256_v17, %v1260_v18  ;;  %v2636_v23 = vcombine.low %v1256_v17, %v1260_v18  ;;  %v1290_v18 = vld [vmem:[#allocation10 + $0x150] sm:$0xff] }
 0x221   : > { %1706 = vmatmul.mubr.bf16.vlgmr.msra.gmra.mrb[12].mxu0 %v3728_v32 }
 0x222   : > { %1756 = vmatpush1.bf16.msra.mxu0 %v2634_v21  ;;  %1787 = vmatprep.mubr.bf16.mxu0 %v3369_v0  ;;  %v1264_v21 = vld [vmem:[#allocation10 + $0x80] sm:$0xff] }
 0x223   : > { %1757 = vmatprep.subr.bf16.mxu0 %v2643_v22  ;;  %v1268_v22 = vld [vmem:[#allocation10 + $0xa0] sm:$0xff] }
 0x224   : > { %v2645_v24 = vcombine.high %v1264_v21, %v1268_v22  ;;  %v2644_v27 = vcombine.low %v1264_v21, %v1268_v22  ;;  %v1298_v21 = vld [vmem:[#allocation10 + $0x190] sm:$0xff] }
 0x225   : > { %v1302_v22 = vld [vmem:[#allocation10 + $0x1b0] sm:$0xff] }
 0x226   : > { %1758 = vmatpush1.bf16.msra.mxu0 %v2642_v25  ;;  %v1272_v25 = vld [vmem:[#allocation10 + $0xc0] sm:$0xff] }
 0x227   : > { %1759 = vmatprep.subr.bf16.mxu0 %v2651_v26  ;;  %v1276_v26 = vld [vmem:[#allocation10 + $0xe0] sm:$0xff] }
 0x228   : > { %v2653_v28 = vcombine.high %v1272_v25, %v1276_v26  ;;  %v2652_v34 = vcombine.low %v1272_v25, %v1276_v26  ;;  %v1306_v25 = vld [vmem:[#allocation10 + $0x1d0] sm:$0xff] }
 0x229   : > { %v1310_v26 = vld [vmem:[#allocation10 + $0x1f0] sm:$0xff] }
 0x22a   : > { %1760 = vmatpush1.bf16.msra.mxu0 %v2650_v31  ;;  %v1280_v31 = vld [vmem:[#allocation10 + $0x100] sm:$0xff] }
 0x22b   : > { %1761 = vmatprep.subr.bf16.mxu0 %v2659_v33  ;;  %v1284_v33 = vld [vmem:[#allocation10 + $0x120] sm:$0xff] }
 0x22c   : > { %v2661_v35 = vcombine.high %v1280_v31, %v1284_v33 }
 0x22e   : > { %1762 = vmatpush1.bf16.msra.mxu0 %v2658_v36  ;;  %v1288_v36 = vld [vmem:[#allocation10 + $0x140] sm:$0xff] }
 0x22f   : > { %1763 = vmatprep.subr.bf16.mxu0 %v2667_v37  ;;  %v2660_v37 = vcombine.low %v1280_v31, %v1284_v33 }
 0x232   : > { %1764 = vmatpush1.bf16.msra.mxu0 %v2666_v40  ;;  %v1300_v40 = vld [vmem:[#allocation10 + $0x1a0] sm:$0xff] }
 0x233   : > { %1765 = vmatprep.subr.bf16.mxu0 %v2675_v41  ;;  %v2677_v42 = vcombine.high %v1296_v39, %v1300_v40 }
 0x236   : > { %1766 = vmatpush1.bf16.msra.mxu0 %v2674_v44  ;;  %v1308_v44 = vld [vmem:[#allocation10 + $0x1e0] sm:$0xff] }
 0x237   : > { %1767 = vmatprep.subr.bf16.mxu0 %v2683_v45  ;;  %v2676_v45 = vcombine.low %v1296_v39, %v1300_v40  ;;  %v2685_v46 = vcombine.high %v1304_v43, %v1308_v44 }
 0x23a   : > { %1768 = vmatpush1.bf16.msra.mxu0 %v2682_v48  ;;  %v1250_v48 = vld [vmem:[#allocation10 + $0x10] sm:$0xff] }
 0x23b   : > { %1769 = vmatprep.subr.bf16.mxu0 %v2691_v49  ;;  %v1254_v49 = vld [vmem:[#allocation10 + $0x30] sm:$0xff] }
 0x23e   : > { %1770 = vmatpush1.bf16.msra.mxu0 %v2690_v50 }
 0x241   : > { %1788 = vmatmul.mubr.bf16.vlgmr.msra.gmra.mrb[16].mxu0 %v3728_v32 }
 0x2b4   : > { %v2719_v52 = vpop.f32.mrb[4].mxu0  ;;  %v2741_v57 = vpop.f32.mrb[4].mxu1 }
 0x2b5   : > { %v2720_v54 = vpop.f32.mrb[5].mxu0  ;;  %v2742_v59 = vpop.f32.mrb[5].mxu1 }
 0x2b6   : > { %v2721_v55 = vadd.f32 %v2720_v54, %v2719_v52  ;;  %v2722_v56 = vpop.f32.mrb[6].mxu0  ;;  %v2743_v61 = vadd.f32 %v2742_v59, %v2741_v57  ;;  %v2744_v62 = vpop.f32.mrb[6].mxu1  ;;  %v2684_v54 = vcombine.low %v1304_v43, %v1308_v44  ;;  %v1258_v57 = vld [vmem:[#allocation10 + $0x50] sm:$0xff]  ;;  %v2632_v59 = vcombine.low %v1250_v48, %v1254_v49 }
 0x2b7   : > { %v2723_v58 = vpop.f32.mrb[7].mxu0  ;;  %v2745_v63 = vpop.f32.mrb[7].mxu1  ;;  %v2633_v56 = vcombine.high %v1250_v48, %v1254_v49  ;;  %v1270_v62 = vld [vmem:[#allocation10 + $0xb0] sm:$0xff] }
 0x2b8   : > { %v1051_v60 = vadd.f32 %v2721_v55, %v2587_v53  ;;  %v1262_v58 = vld [vmem:[#allocation10 + $0x70] sm:$0xff] }
 0x2b9   : > { %v2640_v63 = vcombine.low %v1258_v57, %v1262_v58 }
 0x2ba   : > { %v3746_v1 = vadd.f32 %v2743_v61, %v1051_v60  ;;  %v2641_v60 = vcombine.high %v1258_v57, %v1262_v58  ;;  %v1266_v61 = vld [vmem:[#allocation10 + $0x90] sm:$0xff] }
 0x2bb   : > { %v2649_v2 = vcombine.high %v1266_v61, %v1270_v62 }
 0x2bc   : > { %1203 = vperm.xlu0 %2929, %v3746_v1  }
 0x2d4   : > { %v1194_v8 = vpop.f32.mrb[8].mxu0 }
 0x2d5   : > { %v1200_v13 = vpack.c.bf16 %v1194_v8, %v1194_v8  ;;  %v2781_v14 = vpop.f32.mrb[9].mxu0  ;;  %v1278_v8 = vld [vmem:[#allocation10 + $0xf0] sm:$0xff] }
 0x2d6   : > { %v1197_v15 = vpop.f32.mrb[10].mxu0  ;;  %v1282_v14 = vld [vmem:[#allocation10 + $0x110] sm:$0xff] }
 0x2d7   : > { %v2782_v16 = vpop.f32.mrb[11].mxu0  ;;  %2784 = vmatpush3.bf16.xpose.msra.mxu1 %v1200_v13  ;;  %v2657_v13 = vcombine.high %v1274_v3, %v1278_v8  ;;  %v1286_v15 = vld [vmem:[#allocation10 + $0x130] sm:$0xff] }
 0x2d8   : > { %1632 = vmatprep.subr.bf16.mxu1 %v2629_v12  ;;  %v2648_v12 = vcombine.low %v1266_v61, %v1270_v62  ;;  %v2656_v16 = vcombine.low %v1274_v3, %v1278_v8  ;;  %v2665_v17 = vcombine.high %v1282_v14, %v1286_v15 }
 0x2de   : > { %2786 = vmatmul.mubr.bf16.vlgmr.msra.gmra.mrb[8].mxu1 %v3724_v29  ;;  %v1292_v29 = vld [vmem:[#allocation10 + $0x160] sm:$0xff] }
 0x2df   : > { %1633 = vmatpush1.bf16.msra.mxu1 %v2628_v19  ;;  %1664 = vmatprep.mubr.bf16.mxu1 %v3369_v0  ;;  %v2669_v38 = vcombine.high %v1288_v36, %v1292_v29  ;;  %v2668_v41 = vcombine.low %v1288_v36, %v1292_v29  ;;  %v1294_v19 = vld [vmem:[#allocation10 + $0x170] sm:$0xff]  ;;  %v2688_v29 = vcombine.low %v1306_v25, %v1310_v26 }
 0x2e0   : > { %1634 = vmatprep.subr.bf16.mxu1 %v2637_v20  ;;  %v2664_v20 = vcombine.low %v1282_v14, %v1286_v15 }
 0x2e3   : > { %1635 = vmatpush1.bf16.msra.mxu1 %v2636_v23  ;;  %v2672_v23 = vcombine.low %v1290_v18, %v1294_v19 }
 0x2e4   : > { %1636 = vmatprep.subr.bf16.mxu1 %v2645_v24  ;;  %v2681_v24 = vcombine.high %v1298_v21, %v1302_v22 }
 0x2e7   : > { %1637 = vmatpush1.bf16.msra.mxu1 %v2644_v27  ;;  %v2680_v27 = vcombine.low %v1298_v21, %v1302_v22 }
 0x2e8   : > { %1638 = vmatprep.subr.bf16.mxu1 %v2653_v28  ;;  %v2689_v28 = vcombine.high %v1306_v25, %v1310_v26 }
 0x2eb   : > { %1639 = vmatpush1.bf16.msra.mxu1 %v2652_v34 }
 0x2ec   : > { %1640 = vmatprep.subr.bf16.mxu1 %v2661_v35 }
 0x2ef   : > { %1641 = vmatpush1.bf16.msra.mxu1 %v2660_v37 }
 0x2f0   : > { %1642 = vmatprep.subr.bf16.mxu1 %v2669_v38 }
 0x2f3   : > { %1643 = vmatpush1.bf16.msra.mxu1 %v2668_v41 }
 0x2f4   : > { %1644 = vmatprep.subr.bf16.mxu1 %v2677_v42  ;;  %v3751_v47 = vpop.f32.mrb[12].mxu0 }
 0x2f5   : > { %v3753_v50 = vpop.f32.mrb[13].mxu0 }
 0x2f6   : > { %v1806_v51 = vcombine.low %v3751_v47, %v3753_v50  ;;  %v1807_v52 = vcombine.high %v3751_v47, %v3753_v50  ;;  %v1711_v53 = vpop.f32.mrb[14].mxu0 }
 0x2f7   : > { %1645 = vmatpush1.bf16.msra.mxu1 %v2676_v45  ;;  %v1712_v55 = vpop.f32.mrb[15].mxu0 }
 0x2f8   : > { %1646 = vmatprep.subr.bf16.mxu1 %v2685_v46 }
 0x2fb   : > { %1647 = vmatpush1.bf16.msra.mxu1 %v2684_v54 }
 0x2fc   : > { %1714 = vmatprep.subr.bf16.mxu1 %v2633_v56 }
 0x2fe   : > { %1665 = vmatmul.mubr.bf16.vlgmr.msra.gmra.mrb[12].mxu1 %v3728_v32 }
 0x2ff   : > { %1715 = vmatpush1.bf16.msra.mxu1 %v2632_v59  ;;  %1746 = vmatprep.mubr.bf16.mxu1 %v3369_v0  ;;  %v2673_v0 = vcombine.high %v1290_v18, %v1294_v19 }
 0x300   : > { %1716 = vmatprep.subr.bf16.mxu1 %v2641_v60 }
 0x303   : > { %1717 = vmatpush1.bf16.msra.mxu1 %v2640_v63 }
 0x304   : > { %1718 = vmatprep.subr.bf16.mxu1 %v2649_v2 }
 0x307   : > { %1719 = vmatpush1.bf16.msra.mxu1 %v2648_v12 }
 0x308   : > { %1720 = vmatprep.subr.bf16.mxu1 %v2657_v13 }
 0x30b   : > { %1721 = vmatpush1.bf16.msra.mxu1 %v2656_v16 }
 0x30c   : > { %1722 = vmatprep.subr.bf16.mxu1 %v2665_v17 }
 0x30f   : > { %1723 = vmatpush1.bf16.msra.mxu1 %v2664_v20 }
 0x310   : > { %1724 = vmatprep.subr.bf16.mxu1 %v2673_v0 }
 0x313   : > { %1725 = vmatpush1.bf16.msra.mxu1 %v2672_v23 }
 0x314   : > { %1726 = vmatprep.subr.bf16.mxu1 %v2681_v24  ;;  %v1789_v31 = vpop.f32.mrb[16].mxu0 }
 0x315   : > { %v1791_v33 = vpop.f32.mrb[17].mxu0 }
 0x316   : > { %v1810_v34 = vcombine.low %v1789_v31, %v1791_v33  ;;  %v1811_v35 = vcombine.high %v1789_v31, %v1791_v33  ;;  %v1793_v36 = vpop.f32.mrb[18].mxu0 }
 0x317   : > { %1727 = vmatpush1.bf16.msra.mxu1 %v2680_v27  ;;  %v1794_v37 = vpop.f32.mrb[19].mxu0 }
 0x318   : > { %1728 = vmatprep.subr.bf16.mxu1 %v2689_v28 }
 0x31b   : > { %1729 = vmatpush1.bf16.msra.mxu1 %v2688_v29 }
 0x31c   : > { %2789 = vmatprep.subr.bf16.mxu1 %v3726_v30 }
 0x31e   : > { %1747 = vmatmul.mubr.bf16.vlgmr.msra.gmra.mrb[16].mxu1 %v3728_v32  ;;  %v2047_v32 = vsub.s32 4, %v3709_v6 }
 0x320   : > { %v2048_v46 = vrot.slane %v3746_v1, %v2047_v32 }
 0x324   : > { %2790 = vmatpush3.bf16.xpose.msra.mxu1 %v3726_v30  ;;  %v3373_v30 = vmov 1966171168  }
 0x325   : > { %v1813_v45 = vunpack.c.l.s4 %v3373_v30 }
 0x327   : > { %v1814_v48 = vunpack.c.0.s8 %v1813_v45 }
 0x329   : > { %v3776_v49 = vsub.s32 %v1814_v48, %v3709_v6 }
 0x32b   : > { %v1832_v59 = vrot.slane %v1806_v51, %v3776_v49  ;;  %v1839_v60 = vrot.slane %v1807_v52, %v3776_v49  ;;  %v1860_v51 = vrot.slane %v1810_v34, %v3776_v49  ;;  %v1867_v18 = vrot.slane %v1811_v35, %v3776_v49 }
 0x33b   : > { %v1204_v38 = vpop.permute.xlu0 %1203 }
 0x3b1   : > { %v1240_v39 = vpop.f32.mrb[8].mxu1 }
 0x3b2   : > { %v3764_v40 = vadd.f32 %v1240_v39, %v1204_v38  ;;  %v2787_v41 = vpop.f32.mrb[9].mxu1 }
 0x3b3   : > { %v1243_v42 = vpop.f32.mrb[10].mxu1 }
 0x3b4   : > { %v2788_v43 = vpop.f32.mrb[11].mxu1  ;;  %v2091_v44 = vsel %vm1246_vm1, %v3764_v40, -inf  ;;  %1247 = vst.msk [vmem:[%s4002_s16] sm:$0xff] %vm1246_vm1, %v3764_v40  ;;  %s3222_s16 = scalar_lea.vmem %s3221_s9, 2048 }
 0x3b5   : > { %2092 = vmax.xlane.f32.xlu0 %v2091_v44  ;;  %v3801_v44 = vand.u32 127, %v487_v5  ;;  %v2034_v5 = vrot.slane %v3746_v1, %v497_v10  ;;  %p3224_p12 = scmp.lt.s32.totalorder %s3222_s16, %s3216_s1 }
 0x3b7   : > { %p3225_p13 = por %p3224_p12, %p3223_p11 }
 0x3b9   : > { %p3226_p3 = pnand %p3225_p13, %p3219_p1 }
 0x3cb   : > { %2050 = vbcast.lane.b32.xlu0 %v2048_v46, 256 }
 0x3d1   : > { %v1666_v53 = vpop.f32.mrb[12].mxu1 }
 0x3d2   : > { %v1668_v54 = vpop.f32.mrb[13].mxu1 }
 0x3d3   : > { %v1804_v55 = vcombine.low %v1666_v53, %v1668_v54  ;;  %v1805_v56 = vcombine.high %v1666_v53, %v1668_v54  ;;  %v1670_v57 = vpop.f32.mrb[14].mxu1  ;;  %v2020_v53 = vrot.slane %v3746_v1, %v3712_v7  ;;  %v2027_v54 = vrot.slane %v3746_v1, %v493_v9 }
 0x3d4   : > { %v1671_v58 = vpop.f32.mrb[15].mxu1  ;;  %v2061_v57 = vsub.s32 6, %v3709_v6 }
 0x3d5   : > { %v1818_v61 = vrot.slane %v1804_v55, %v3776_v49  ;;  %v1825_v62 = vrot.slane %v1805_v56, %v3776_v49  ;;  %v2054_v55 = vsub.s32 5, %v3709_v6 }
 0x3d6   : > { %v2062_v9 = vrot.slane %v3746_v1, %v2061_v57 }
 0x3d7   : > { %v1868_v63 = vcombine.low %v1818_v61, %v1832_v59  ;;  %v1869_v2 = vcombine.high %v1818_v61, %v1832_v59  ;;  %v1870_v3 = vcombine.low %v1825_v62, %v1839_v60  ;;  %v1871_v8 = vcombine.high %v1825_v62, %v1839_v60 }
 0x3d8   : > { %v2055_v56 = vrot.slane %v3746_v1, %v2054_v55 }
 0x3d9   : > { %v1882_v21 = vrot.slane %v1868_v63, %v3776_v49  ;;  %v1896_v22 = vrot.slane %v1869_v2, %v3776_v49  ;;  %v1889_v27 = vrot.slane %v1870_v3, %v3776_v49  ;;  %v1903_v28 = vrot.slane %v1871_v8, %v3776_v49 }
 0x3f1   : > { %v1748_v12 = vpop.f32.mrb[16].mxu1 }
 0x3f2   : > { %v1750_v13 = vpop.f32.mrb[17].mxu1 }
 0x3f3   : > { %v1808_v14 = vcombine.low %v1748_v12, %v1750_v13  ;;  %v1809_v15 = vcombine.high %v1748_v12, %v1750_v13  ;;  %v1752_v16 = vpop.f32.mrb[18].mxu1 }
 0x3f4   : > { %v1753_v17 = vpop.f32.mrb[19].mxu1 }
 0x3f5   : > { %v1846_v47 = vrot.slane %v1808_v14, %v3776_v49  ;;  %v1853_v50 = vrot.slane %v1809_v15, %v3776_v49 }
 0x3f7   : > { %v1872_v52 = vcombine.low %v1846_v47, %v1860_v51  ;;  %v1873_v19 = vcombine.high %v1846_v47, %v1860_v51  ;;  %v1874_v20 = vcombine.low %v1853_v50, %v1867_v18  ;;  %v1875_v0 = vcombine.high %v1853_v50, %v1867_v18 }
 0x3f8   : > { %v2068_v50 = vsub.s32 7, %v3709_v6 }
 0x3f9   : > { %v1910_v23 = vrot.slane %v1872_v52, %v3776_v49  ;;  %v1917_v24 = vrot.slane %v1874_v20, %v3776_v49  ;;  %v1924_v25 = vrot.slane %v1873_v19, %v3776_v49  ;;  %v1931_v26 = vrot.slane %v1875_v0, %v3776_v49 }
 0x3fa   : > { %v2069_v20 = vrot.slane %v3746_v1, %v2068_v50 }
 0x3fb   : > { %v1932_v31 = vcombine.low %v1882_v21, %v1910_v23  ;;  %v1936_v33 = vcombine.low %v1896_v22, %v1924_v25  ;;  %v1933_v34 = vcombine.high %v1882_v21, %v1910_v23  ;;  %v1937_v35 = vcombine.high %v1896_v22, %v1924_v25 }
 0x3fc   : > { %v1934_v36 = vcombine.low %v1889_v27, %v1917_v24  ;;  %v1938_v29 = vcombine.low %v1903_v28, %v1931_v26  ;;  %v1935_v37 = vcombine.high %v1889_v27, %v1917_v24  ;;  %v1939_v38 = vcombine.high %v1903_v28, %v1931_v26 }
 0x3fd   : > { %v1948_v39 = vpack.c.bf16 %v1936_v33, %v1932_v31  ;;  %v1949_v41 = vpack.c.bf16 %v1937_v35, %v1933_v34 }
 0x3fe   : > { %v1950_v42 = vpack.c.bf16 %v1938_v29, %v1934_v36  ;;  %v1951_v43 = vpack.c.bf16 %v1939_v38, %v1935_v37 }
 0x3ff   : > { %2791 = vmatprep.mubr.bf16.mxu1 %v1948_v39 }
 0x400   : > { %2792 = vmatmul.mubr.bf16.vlgmr.msra.gmra.mrb[20].mxu1 %v1949_v41 }
 0x401   : > { %2795 = vmatprep.mubr.bf16.mxu1 %v1950_v42 }
 0x408   : > { %2796 = vmatmul.mubr.bf16.gmra.mrb[24].mxu1 %v1951_v43 }
 0x442   : > { %v2093_v32 = vpop.xlane.xlu0 %2092 }
 0x443   : > { %vm2094_vm2 = vcmp.eq.f32.partialorder %v3764_v40, %v2093_v32  ;;  %v2041_v40 = vrot.slane %v3746_v1, %v501_v11 }
 0x444   : > { %v2095_v30 = vsel %vm2094_vm2, %v3801_v44, 8 }
 0x445   : > { %v2096_v45 = vsel %vm1246_vm1, %v2095_v30, 2147483647 }
 0x446   : > { %v2098_v46 = vshra.s32 %v2096_v45, 16  ;;  %v2097_v59 = vand.u32 65535, %v2096_v45  ;;  %v2051_v8 = vpop.permute.xlu0 %2050 }
 0x448   : > { %v2100_v48 = vcvt.s32.f32 %v2098_v46  ;;  %v2099_v63 = vcvt.s32.f32 %v2097_v59 }
 0x44a   : > { %2101 = vmin.xlane.f32.xlu1 %v2100_v48 }
 0x45b   : > { %2022 = vbcast.lane.b32.xlu1 %v2020_v53, 256 }
 0x45f   : > { %2029 = vbcast.lane.b32.xlu1 %v2027_v54, 256 }
 0x463   : > { %2036 = vbcast.lane.b32.xlu1 %v2034_v5, 256 }
 0x467   : > { %2043 = vbcast.lane.b32.xlu1 %v2041_v40, 256 }
 0x46b   : > { %2057 = vbcast.lane.b32.xlu1 %v2055_v56, 256 }
 0x46f   : > { %2064 = vbcast.lane.b32.xlu1 %v2062_v9, 256 }
 0x4d3   : > { %v2793_v58 = vpop.f32.mrb[20].mxu1 }
 0x4d4   : > { %v1986_v10 = vpop.f32.mrb[21].mxu1 }
 0x4d5   : > { %v2794_v60 = vpop.f32.mrb[22].mxu1 }
 0x4d6   : > { %v1989_v61 = vpop.f32.mrb[23].mxu1 }
 0x4d7   : > { %v2102_v62 = vpop.xlane.xlu1 %2101 }
 0x4d8   : > { %vm2103_vm3 = vcmp.eq.f32.partialorder %v2100_v48, %v2102_v62  ;;  %v2108_v24 = vcvt.f32.s32 %v2102_v62 }
 0x4d9   : > { %v2104_v11 = vsel %vm2103_vm3, %v2099_v63, inf }
 0x4da   : > { %2105 = vmin.xlane.f32.xlu1 %v2104_v11  ;;  %v2109_v26 = vshll.u32 %v2108_v24, 16 }
 0x4db   : > { %v2797_v2 = vpop.f32.mrb[24].mxu1  ;;  %v2023_v3 = vpop.permute.xlu1 %2022 }
 0x4dc   : > { %v2073_v12 = vadd.f32 %v2023_v3, %v1986_v10  ;;  %v2002_v13 = vpop.f32.mrb[25].mxu1 }
 0x4dd   : > { %v3822_v14 = vadd.f32 %v2051_v8, %v2002_v13  ;;  %v2798_v15 = vpop.f32.mrb[26].mxu1 }
 0x4de   : > { %2081 = vst.msk [vmem:[%s3824_s13] sm:$0xff] %vm1246_vm1, %v2073_v12  ;;  %v2005_v16 = vpop.f32.mrb[27].mxu1 }
 0x4df   : > { %2085 = vst.msk [vmem:[%s3824_s13 + $0x20] sm:$0xff] %vm1246_vm1, %v3822_v14  ;;  %v2030_v17 = vpop.permute.xlu1 %2029 }
 0x4e0   : > { %v2074_v51 = vadd.f32 %v2030_v17, %v1989_v61 }
 0x4e2   : > { %2082 = vst.msk [vmem:[%s3824_s13 + $0x8] sm:$0xff] %vm1246_vm1, %v2074_v51 }
 0x4e3   : > { %v2037_v18 = vpop.permute.xlu1 %2036 }
 0x4e4   : > { %v2075_v47 = vadd.f32 %v2793_v58, %v2037_v18 }
 0x4e6   : > { %2083 = vst.msk [vmem:[%s3824_s13 + $0x10] sm:$0xff] %vm1246_vm1, %v2075_v47 }
 0x4e7   : > { %v2044_v52 = vpop.permute.xlu1 %2043 }
 0x4e8   : > { %v2076_v19 = vadd.f32 %v2794_v60, %v2044_v52 }
 0x4ea   : > { %2084 = vst.msk [vmem:[%s3824_s13 + $0x18] sm:$0xff] %vm1246_vm1, %v2076_v19 }
 0x4eb   : > { %2071 = vbcast.lane.b32.xlu1 %v2069_v20, 256  ;;  %v2058_v0 = vpop.permute.xlu1 %2057 }
 0x4ec   : > { %v2078_v21 = vadd.f32 %v2058_v0, %v2005_v16 }
 0x4ee   : > { %2086 = vst.msk [vmem:[%s3824_s13 + $0x28] sm:$0xff] %vm1246_vm1, %v2078_v21 }
 0x4ef   : > { %v2065_v22 = vpop.permute.xlu1 %2064 }
 0x4f0   : > { %v2079_v23 = vadd.f32 %v2797_v2, %v2065_v22 }
 0x4f2   : > { %2087 = vst.msk [vmem:[%s3824_s13 + $0x30] sm:$0xff] %vm1246_vm1, %v2079_v23 }
 0x567   : > { %v2106_v25 = vpop.xlane.xlu1 %2105 }
 0x568   : > { %v2107_v27 = vcvt.f32.s32 %v2106_v25 }
 0x56a   : > { %v2110_v28 = vadd.s32 %v2109_v26, %v2107_v27 }
 0x56b   : > { %v2072_v31 = vpop.permute.xlu1 %2071 }
 0x56c   : > { %vm2111_vm4 = vcmp.eq.s32.totalorder %v3801_v44, %v2110_v28  ;;  %v2080_v1 = vadd.f32 %v2798_v15, %v2072_v31 }
 0x56d   : > { %v2692_v33 = vsel %vm2111_vm4, 1.0, %v3370_v4 }
 0x56e   : > { %v2115_v34 = vcombine.high %v2692_v33, %v2692_v33  ;;  %v2122_v35 = vrot.slane %v2692_v33, %v3776_v49  ;;  %2088 = vst.msk [vmem:[%s3824_s13 + $0x38] sm:$0xff] %vm1246_vm1, %v2080_v1 }
 0x570   : > { %v2138_v36 = vrot.slane %v2122_v35, %v3776_v49  ;;  %v2130_v29 = vcombine.high %v2122_v35, %v2122_v35  ;;  %v2129_v37 = vrot.slane %v2115_v34, %v3776_v49 }
 0x572   : > { %v2167_v38 = vrot.slane %v2138_v36, %v3712_v7  ;;  %v2152_v39 = vrot.slane %v2130_v29, %v3776_v49  ;;  %v2160_v41 = vcombine.high %v2138_v36, %v2138_v36  ;;  %v2145_v42 = vrot.slane %v2129_v37, %v3776_v49 }
 0x573   : > { %v2131_v43 = vcombine.high %v2129_v37, %v2129_v37 }
 0x574   : > { %v2204_v32 = vmul.f32 %v2167_v38, %v2073_v12  ;;  %v2171_v4 = vrot.slane %v2152_v39, %v3712_v7  ;;  %v2175_v30 = vrot.slane %v2160_v41, %v3712_v7  ;;  %v2162_v45 = vcombine.high %v2152_v39, %v2152_v39 }
 0x575   : > { %v2183_v46 = vrot.slane %v2145_v42, %v3712_v7  ;;  %v2159_v48 = vrot.slane %v2131_v43, %v3776_v49  ;;  %v2161_v53 = vcombine.high %v2145_v42, %v2145_v42 }
 0x576   : > { %v2212_v54 = vsel %vm1246_vm1, %v2204_v32, 0.0  ;;  %v2205_v5 = vmul.f32 %v2171_v4, %v2074_v51  ;;  %v2206_v40 = vmul.f32 %v2175_v30, %v2075_v47  ;;  %v2179_v55 = vrot.slane %v2162_v45, %v3712_v7 }
 0x577   : > { %2213 = vadd.xlane.f32.xlu1 %v2212_v54  ;;  %v2163_v56 = vcombine.high %v2159_v48, %v2159_v48  ;;  %v2187_v58 = vrot.slane %v2159_v48, %v3712_v7  ;;  %v2208_v49 = vmul.f32 %v2183_v46, %v3822_v14  ;;  %v2191_v60 = vrot.slane %v2161_v53, %v3712_v7 }
 0x578   : > { %v2215_v57 = vsel %vm1246_vm1, %v2205_v5, 0.0  ;;  %v2207_v9 = vmul.f32 %v2179_v55, %v2076_v19  ;;  %v2218_v10 = vsel %vm1246_vm1, %v2206_v40, 0.0 }
 0x579   : > { %2216 = vadd.xlane.f32.xlu0 %v2215_v57  ;;  %v2195_v59 = vrot.slane %v2163_v56, %v3712_v7  ;;  %v2209_v63 = vmul.f32 %v2187_v58, %v2078_v21  ;;  %v2224_v11 = vsel %vm1246_vm1, %v2208_v49, 0.0  ;;  %v2210_v2 = vmul.f32 %v2191_v60, %v2079_v23 }
 0x57a   : > { %v2221_v62 = vsel %vm1246_vm1, %v2207_v9, 0.0 }
 0x57b   : > { %2219 = vadd.xlane.f32.xlu1 %v2218_v10  ;;  %v2211_v61 = vmul.f32 %v2195_v59, %v2080_v1  ;;  %v2227_v3 = vsel %vm1246_vm1, %v2209_v63, 0.0  ;;  %v2230_v8 = vsel %vm1246_vm1, %v2210_v2, 0.0 }
 0x57d   : > { %2222 = vadd.xlane.f32.xlu0 %v2221_v62  ;;  %v2233_v7 = vsel %vm1246_vm1, %v2211_v61, 0.0 }
 0x57f   : > { %2225 = vadd.xlane.f32.xlu1 %v2224_v11 }
 0x581   : > { %2228 = vadd.xlane.f32.xlu0 %v2227_v3 }
 0x583   : > { %2231 = vadd.xlane.f32.xlu1 %v2230_v8 }
 0x585   : > { %2234 = vadd.xlane.f32.xlu0 %v2233_v7 }
 0x586   : > { %3229 = shalt.err (!%p3226_p3)
}
 0x587   : > { %s3230_s13 = scalar_lea.hbm %s3875_s23, 1024  ;;  %s3234_s21 = scalar_lea.hbm %s3995_s8, 2048 }
 0x588   : > { %p3231_p7 = scmp.ne.s32.totalorder %s3875_s23, %s3230_s13  ;;  %p3235_p8 = scmp.lt.u32.totalorder %s3875_s23, %s3995_s8 }
 0x589   : > { %p3236_p0 = scmp.lt.u32.totalorder %s3234_s21, %s3230_s13  ;;  %p3238_p6 = scmp.lt.u32.totalorder %s3230_s13, %s3875_s23 }
 0x58a   : > { %p3232_p9 = pnand %p3231_p7, %p4028_p5 }
 0x58b   : > { %p3237_p2 = por %p3236_p0, %p3235_p8 }
 0x58c   : > { %p3233_p4 = pneg %p3232_p9 }
 0x58d   : > { %p3239_p10 = por %p3238_p6, %p3237_p2 }
 0x58f   : > { %p3240_p1 = pnand %p3239_p10, %p3233_p4 }
 0x591   : > { %3243 = shalt.err (!%p3240_p1)
}
 0x592   : > { %s3375_s16 = smov 128   ;;  %s3376_s1 = smov 8  }
 0x593   : > { %2826 = dma.vmem_to_hbm [thread:$0]  (%p4028_p5), %s3878_s26, 1024, %s3875_s23, %s3880_s28, %s3375_s16, %s3375_s16, %s3376_s1  }
 0x594   : > { %s2696_s9 = sshll.u32 %s3450_s15, 7  ;;  %s4029_s21 = scalar_lea.vmem [#allocation14], %s3682_s29 }
 0x595   : > { %s3910_s18 = scalar_lea.hbm %s3994_s7, %s2696_s9  ;;  %s2316_s20 = sshll.u32 %s4029_s21, 4  ;;  %s2317_s20 = int_to_ptr.vmem [resolvable:$true] %s2316_s20 }
 0x596   : > { %s2293_s25 = scalar_lea.sflag [#allocation4], %s3679_s19  ;;  %s3244_s0 = scalar_lea.vmem %s2317_s20, 128 }
 0x597   : > { %p3245_p11 = scmp.ne.s32.totalorder %s2317_s20, %s3244_s0  ;;  %s3377_s2 = smov [#allocation14]  }
 0x598   : > { %s3248_s3 = sshll.u32 %s3377_s2, 4  ;;  %s3249_s3 = int_to_ptr.vmem [resolvable:$false] %s3248_s3 }
 0x599   : > { %p3246_p12 = pnand %p3245_p11, %p4028_p5  ;;  %s3250_s23 = scalar_lea.vmem %s3249_s3, 256 }
 0x59a   : > { %p3251_p3 = scmp.lt.s32.totalorder %s2317_s20, %s3249_s3  ;;  %p3252_p7 = scmp.lt.s32.totalorder %s3250_s23, %s3244_s0 }
 0x59b   : > { %p3247_p13 = pneg %p3246_p12 }
 0x59c   : > { %p3253_p9 = por %p3252_p7, %p3251_p3 }
 0x59e   : > { %p3254_p4 = pnand %p3253_p9, %p3247_p13 }
 0x5a0   : > { %3257 = shalt.err (!%p3254_p4)
}
 0x5a1   : > { %s3258_s19 = scalar_lea.hbm %s3910_s18, 128  ;;  %s3262_s2 = scalar_lea.hbm %s3994_s7, 256 }
 0x5a2   : > { %p3259_p8 = scmp.ne.s32.totalorder %s3910_s18, %s3258_s19  ;;  %p3263_p6 = scmp.lt.u32.totalorder %s3910_s18, %s3994_s7 }
 0x5a3   : > { %p3264_p10 = scmp.lt.u32.totalorder %s3262_s2, %s3258_s19  ;;  %p3266_p11 = scmp.lt.u32.totalorder %s3258_s19, %s3910_s18 }
 0x5a4   : > { %p3260_p0 = pnand %p3259_p8, %p4028_p5 }
 0x5a5   : > { %p3265_p1 = por %p3264_p10, %p3263_p6 }
 0x5a6   : > { %p3261_p2 = pneg %p3260_p0 }
 0x5a7   : > { %p3267_p12 = por %p3266_p11, %p3265_p1 }
 0x5a9   : > { %p3268_p13 = pnand %p3267_p12, %p3261_p2 }
 0x5ab   : > { %3271 = shalt.err (!%p3268_p13)
}
 0x5ac   : > { %2825 = dma.vmem_to_hbm [thread:$0]  (%p4028_p5), %s2317_s20, 128, %s3910_s18, %s2293_s25   ;;  %v2246_v12 = vsub.s32 %v3801_v44, %v3709_v6  ;;  %vm2276_vm5 = vcmask 1041409   ;;  %vm2278_vm6 = vcmask 1042434   ;;  %vm2280_vm7 = vcmask 1043459  }
 0x5ad   : > { %vm2282_vm8 = vcmask 1044484   ;;  %vm2284_vm9 = vcmask 1045509   ;;  %vm2286_vm10 = vcmask 1046534   ;;  %s448_s0 = scalar_lea.vmem [#allocation17], %s3682_s29  ;;  %vm2288_vm11 = vcmask 1047559   ;;  %s4030_s21 = sld [smem:[#allocation28_spill]] }
 0x5ae   : > { %s2345_s14 = sshll.u32 %s448_s0, 4  ;;  %s3378_s25 = smov [#allocation17]   ;;  %s3942_s14 = int_to_ptr.vmem [resolvable:$true] %s2345_s14 }
 0x5af   : > { %s3272_s29 = scalar_lea.vmem %s3942_s14, 128  ;;  %s3276_s15 = sshll.u32 %s3378_s25, 4  ;;  %s3277_s15 = int_to_ptr.vmem [resolvable:$false] %s3276_s15 }
 0x5b0   : > { %p3273_p3 = scmp.ne.s32.totalorder %s3942_s14, %s3272_s29  ;;  %s3278_s23 = scalar_lea.vmem %s3277_s15, 256 }
 0x5b1   : > { %p3279_p4 = scmp.lt.s32.totalorder %s3942_s14, %s3277_s15  ;;  %p3280_p8 = scmp.lt.s32.totalorder %s3278_s23, %s3272_s29 }
 0x5b2   : > { %p3274_p7 = pnand %p3273_p3, %p4028_p5 }
 0x5b3   : > { %s3940_s20 = scalar_lea.hbm %s4030_s21, %s2696_s9  ;;  %p3281_p0 = por %p3280_p8, %p3279_p4 }
 0x5b4   : > { %p3275_p9 = pneg %p3274_p7 }
 0x5b6   : > { %p3282_p2 = pnand %p3281_p0, %p3275_p9 }
 0x604   : > { %v2214_v13 = vpop.xlane.xlu1 %2213 }
 0x605   : > { %v2247_v15 = vrot.slane %v2214_v13, %v2246_v12 }
 0x606   : > { %v2217_v14 = vpop.xlane.xlu0 %2216 }
 0x607   : > { %v2251_v16 = vrot.slane %v2217_v14, %v2246_v12 }
 0x608   : > { %v2220_v17 = vpop.xlane.xlu1 %2219 }
 0x609   : > { %v2277_v51 = vsel %vm2276_vm5, %v2251_v16, %v2247_v15  ;;  %v2255_v18 = vrot.slane %v2220_v17, %v2246_v12 }
 0x60a   : > { %v2223_v47 = vpop.xlane.xlu0 %2222 }
 0x60b   : > { %v2279_v50 = vsel %vm2278_vm6, %v2255_v18, %v2277_v51  ;;  %v2259_v52 = vrot.slane %v2223_v47, %v2246_v12 }
 0x60c   : > { %v2226_v19 = vpop.xlane.xlu1 %2225 }
 0x60d   : > { %v2281_v20 = vsel %vm2280_vm7, %v2259_v52, %v2279_v50  ;;  %v2263_v0 = vrot.slane %v2226_v19, %v2246_v12 }
 0x60e   : > { %v2229_v6 = vpop.xlane.xlu0 %2228 }
 0x60f   : > { %v2283_v44 = vsel %vm2282_vm8, %v2263_v0, %v2281_v20  ;;  %v2267_v21 = vrot.slane %v2229_v6, %v2246_v12 }
 0x610   : > { %v2232_v22 = vpop.xlane.xlu1 %2231 }
 0x611   : > { %v2285_v23 = vsel %vm2284_vm9, %v2267_v21, %v2283_v44  ;;  %v2271_v24 = vrot.slane %v2232_v22, %v2246_v12 }
 0x612   : > { %v2235_v25 = vpop.xlane.xlu0 %2234 }
 0x613   : > { %v2287_v26 = vsel %vm2286_vm10, %v2271_v24, %v2285_v23  ;;  %v2275_v27 = vrot.slane %v2235_v25, %v2246_v12 }
 0x615   : > { %v2289_v28 = vsel %vm2288_vm11, %v2275_v27, %v2287_v26 }
 0x616   : > { %2291 = vst.msk [vmem:[%s448_s0] sm:$0xff] %vm1246_vm1, %v2289_v28 }
 0x617   : > { %3285 = shalt.err (!%p3282_p2)
}
 0x618   : > { %s3286_s9 = scalar_lea.hbm %s3940_s20, 128  ;;  %s3290_s16 = scalar_lea.hbm %s4030_s21, 256 }
 0x619   : > { %p3287_p6 = scmp.ne.s32.totalorder %s3940_s20, %s3286_s9  ;;  %p3291_p11 = scmp.lt.u32.totalorder %s3940_s20, %s4030_s21 }
 0x61a   : > { %p3292_p12 = scmp.lt.u32.totalorder %s3290_s16, %s3286_s9  ;;  %p3294_p3 = scmp.lt.u32.totalorder %s3286_s9, %s3940_s20 }
 0x61b   : > { %p3288_p10 = pnand %p3287_p6, %p4028_p5 }
 0x61c   : > { %p3293_p13 = por %p3292_p12, %p3291_p11 }
 0x61d   : > { %p3289_p1 = pneg %p3288_p10 }
 0x61e   : > { %p3295_p7 = por %p3294_p3, %p3293_p13 }
 0x620   : > { %p3296_p9 = pnand %p3295_p7, %p3289_p1 }
 0x622   : > { %3299 = shalt.err (!%p3296_p9)
}
 0x623   : > { %2827 = dma.vmem_to_hbm [thread:$0]  (%p4028_p5), %s3942_s14, 128, %s3940_s20, %s3880_s28  }
 0x624 PF: > { %s2357_s3 = sand.u32 1, %s3342_s30   ;;  %p4031_p4 = scmp.ne.s32.totalorder %s4018_s24, 0 }
 0x625   : > { %p4032_p8 = scmp.ge.s32.totalorder %s3354_s12, 2  ;;  %s2358_s0 = scalar_lea.sflag [#allocation4], %s2357_s3 }
 0x627   : > { %p2855_p0 = pnand %p4032_p8, %p4031_p4 }
 0x629   : > { %3333 = dma.done.wait (!%p2855_p0), %s2358_s0, 128  }
 0x62a   : > { %3335 = vsyncadd (!%p2855_p0), %s2358_s0, 4294967168  ;;  %s4033_s13 = sadd.s32 4294967294, %s3354_s12  }
 0x62b   : > { %s2366_s18 = sand.u32 1, %s4033_s13  }
 0x62c   : > { %s2367_s29 = scalar_lea.sflag [#allocation16], %s2366_s18 }
 0x62d   : > { %3337 = dma.done.wait (!%p2855_p0), %s2367_s29, 1152  }
 0x62e   : > { %3339 = vsyncadd (!%p2855_p0), %s2367_s29, 4294966144  ;;  %p29_p5 = scmp.ge.s32.totalorder %s3601_s27, 4   ;;  %s4034_s30 = smov %s3346_s10 }
 0x62f   : > { %s4035_s10 = smov %s3350_s11  ;;  %s4036_s11 = smov %s3612_s17 }
 0x630   : > { %s4037_s12 = smov %s3601_s27  ;;  %31 = sbr.rel (!%p29_p5) target bundleno = 16 (0x10), region = 149 }
 0x637   :  { %2381 = vsyncpa [#allocation3], 1 }
 0x638   :  { %2383 = vsyncpa [#allocation3 + $0x1], 1 }
 0x639   :  { %2384 = vsyncpa [#allocation6], 1 }
 0x63a   :  { %2385 = vsyncpa [#allocation9], 1 }
 0x63b   :  { %2386 = vsyncpa [#allocation12], 1 }
 0x63c   :  { %2387 = vsyncpa [#allocation4], 1 }
 0x63d   :  { %2389 = vsyncpa [#allocation4 + $0x1], 1 }
 0x63e   :  { %2390 = vsyncpa [#allocation16], 1 }
 0x63f   :  { %2392 = vsyncpa [#allocation16 + $0x1], 1 }

</bundles_post_ra>
